<compile_context>
chip_gen: v7x
topology: tpu7x:2x2x1
jax: 0.10.0
libtpu: 0.0.40
codegen_flags: <defaults>
</compile_context>

<pallas_src>
import functools

import jax
import jax.numpy as jnp
from jax.experimental import pallas as pl
from jax.experimental.pallas import tpu as pltpu

KW = 4             # kernel_size from the module
PADW = 1           # padding from the module
BN_EPS = 1e-5      # nn.BatchNorm2d default eps
LRELU_SLOPE = 0.2  # nn.LeakyReLU(0.2)
LANE = 128
SUBLANE = 8


def _round_up(x, m):
    return ((x + m - 1) // m) * m


def _vmem_capacity_bytes():
    """Per-core VMEM capacity (generation-aware); conservative fallback."""
    try:
        return int(pltpu.get_tpu_info().vmem_capacity_bytes)
    except Exception:
        return 64 * 1024 * 1024     # v7x per-TensorCore size; safe lower bound


_VMEM_CAP = _vmem_capacity_bytes()
_TILE_BUDGET = int(0.40 * _VMEM_CAP)      # working-set target for one grid step
_VMEM_LIMIT_CAP = int(0.70 * _VMEM_CAP)   # scoped-vmem ceiling (Mosaic headroom)


# ----------------------------------------------------------------------------
# Pallas kernels
# ----------------------------------------------------------------------------
def _make_matmul_kernel(use_bias, use_act):
    """Fused (patches_tile @ W) [+ bias] [+ LeakyReLU] for non-BN layers."""
    def kernel(*refs):
        if use_bias:
            p_ref, w_ref, b_ref, o_ref = refs
        else:
            p_ref, w_ref, o_ref = refs
        y = jnp.dot(p_ref[...], w_ref[...], preferred_element_type=jnp.float32)
        if use_bias:
            y = y + b_ref[...]
        if use_act:
            y = jnp.where(y >= 0.0, y, LRELU_SLOPE * y)
        o_ref[...] = y.astype(o_ref.dtype)
    return kernel


def _make_matmul_stats_kernel(m_valid, tm):
    """BN pass 1: (patches_tile @ W) + per-tile per-channel sum / sum-of-sq.

    `m_valid`/`tm` are static Python ints; rows >= m_valid are zero padding
    and are masked out of the statistics. Stats are taken from the f32
    accumulator *before* the (possibly bf16) store so BN quality is preserved.
    """
    def kernel(p_ref, w_ref, o_ref, stats_ref):
        i = pl.program_id(0)
        y = jnp.dot(p_ref[...], w_ref[...], preferred_element_type=jnp.float32)
        row = i * tm + jax.lax.broadcasted_iota(jnp.int32, (tm, 1), 0)
        yv = jnp.where(row < m_valid, y, 0.0)
        s1 = jnp.sum(yv, axis=0, keepdims=True)
        s2 = jnp.sum(yv * yv, axis=0, keepdims=True)
        stats_ref[...] = jnp.concatenate([s1, s2], axis=0)[None]
        o_ref[...] = y.astype(o_ref.dtype)
    return kernel


def _bn_act_kernel(y_ref, scale_ref, shift_ref, o_ref):
    """BN pass 2: per-channel scale/shift (folded BatchNorm) + LeakyReLU(0.2)."""
    y = y_ref[...].astype(jnp.float32) * scale_ref[...] + shift_ref[...]
    o_ref[...] = jnp.where(y >= 0.0, y, LRELU_SLOPE * y).astype(o_ref.dtype)


# ----------------------------------------------------------------------------
# Tiling helpers
# ----------------------------------------------------------------------------
def _choose_tile(m, k, cout_p, out_bytes):
    """Pick the M tile so the double-buffered working set fits the per-core
    VMEM budget. Never returns a zero/negative tile."""
    m = max(int(m), 1)
    weight_bytes = 2 * k * cout_p * 2                      # bf16 weights, 2 bufs
    per_row = 2 * (k * 2) + 2 * (cout_p * out_bytes) + cout_p * 4
    avail = max(_TILE_BUDGET - weight_bytes, per_row * SUBLANE)
    tm = max(SUBLANE, min(4096, avail // per_row))
    if tm >= 256:
        tm = (tm // 256) * 256                             # packed MXU M passes
    else:
        tm = (tm // SUBLANE) * SUBLANE
    if m <= tm:
        tm = _round_up(m, SUBLANE)                         # single full tile
    m_pad = _round_up(m, tm)
    return tm, m_pad


def _vmem_limit(tm, k, cout_p, out_bytes):
    need = (2 * tm * k * 2                 # double-buffered bf16 patch tiles
            + 2 * k * cout_p * 2           # double-buffered bf16 weights
            + 2 * tm * cout_p * out_bytes  # double-buffered output tiles
            + tm * cout_p * 4              # f32 matmul intermediate
            + 2 * 2 * cout_p * 4           # stats blocks (BN pass 1)
            + (2 << 20))                   # Mosaic internal scratch headroom
    return int(min(max(need, 16 << 20), _VMEM_LIMIT_CAP))


# ----------------------------------------------------------------------------
# JAX glue: im2col patch extraction (pad + strided slices), NHWC, bf16 output
# ----------------------------------------------------------------------------
def _im2col(x, stride):
    n, h, w, c = x.shape
    xp = jnp.pad(x, ((0, 0), (PADW, PADW), (PADW, PADW), (0, 0)))
    hout = (h + 2 * PADW - KW) // stride + 1
    wout = (w + 2 * PADW - KW) // stride + 1
    cols = []
    for i in range(KW):
        for j in range(KW):
            cols.append(xp[:, i:i + stride * hout:stride, j:j + stride * wout:stride, :])
    patches = jnp.concatenate(cols, axis=-1)               # (N, Hout, Wout, KW*KW*C)
    return patches.reshape(n * hout * wout, KW * KW * c), hout, wout


# ----------------------------------------------------------------------------
# One conv block (Conv2d [+ BatchNorm2d] [+ LeakyReLU]) via Pallas
# ----------------------------------------------------------------------------
def _conv_layer_pallas(x, layer, is_last):
    cfg = layer["cfg"]
    n = x.shape[0]
    patches, hout, wout = _im2col(x.astype(jnp.bfloat16), cfg["stride"])
    m, k = patches.shape
    w_mat = layer["w_mat"]                                  # (K, Cout_p) bf16
    cout_p = w_mat.shape[1]
    cout = cfg["cout"]

    out_dtype = jnp.float32 if is_last else jnp.bfloat16    # bf16 intermediates
    out_bytes = 4 if is_last else 2

    tm, m_pad = _choose_tile(m, k, cout_p, out_bytes)
    if m_pad != m:
        patches = jnp.pad(patches, ((0, m_pad - m), (0, 0)))
    grid = (m_pad // tm,)
    num_tiles = grid[0]

    cparams = pltpu.CompilerParams(
        dimension_semantics=("parallel",),
        vmem_limit_bytes=_vmem_limit(tm, k, cout_p, out_bytes))
    flops = 2 * m_pad * k * cout_p
    bytes_accessed = m_pad * k * 2 + k * cout_p * 2 + m_pad * cout_p * out_bytes

    p_spec = pl.BlockSpec((tm, k), lambda i: (i, 0))
    # Weight block index_map is constant -> stays resident between grid steps.
    w_spec = pl.BlockSpec((k, cout_p), lambda i: (0, 0))
    v_spec = pl.BlockSpec((1, cout_p), lambda i: (0, 0))    # per-channel vectors
    o_spec = pl.BlockSpec((tm, cout_p), lambda i: (i, 0))

    if cfg["use_bn"]:
        # Pass 1: matmul + per-tile channel statistics (BN layers have no bias).
        y_raw, partial = pl.pallas_call(
            _make_matmul_stats_kernel(m, tm),
            grid=grid,
            in_specs=[p_spec, w_spec],
            out_specs=[o_spec,
                       pl.BlockSpec((1, 2, cout_p), lambda i: (i, 0, 0))],
            out_shape=[jax.ShapeDtypeStruct((m_pad, cout_p), out_dtype),
                       jax.ShapeDtypeStruct((num_tiles, 2, cout_p), jnp.float32)],
            compiler_params=cparams,
            cost_estimate=pl.CostEstimate(flops=flops, transcendentals=0,
                                          bytes_accessed=bytes_accessed),
        )(patches, w_mat)

        # Tiny O(num_tiles * Cout) cross-tile reduction + BN fold (JAX glue).
        stats = jnp.sum(partial, axis=0)
        mean = stats[0] / m
        # TODO(synk): E[x^2]-E[x]^2 can cancel for large per-channel means; use a
        # shifted / Welford accumulation if this ever runs on non-toy data.
        var = jnp.maximum(stats[1] / m - mean * mean, 0.0)  # biased, training BN
        inv = jax.lax.rsqrt(var + BN_EPS)
        scale = (layer["gamma"] * inv)[None, :]
        shift = (layer["beta"] - mean * layer["gamma"] * inv)[None, :]

        # Pass 2: per-channel scale/shift + LeakyReLU, tiled over M (bf16 in/out).
        y = pl.pallas_call(
            _bn_act_kernel,
            grid=grid,
            in_specs=[o_spec, v_spec, v_spec],
            out_specs=o_spec,
            out_shape=jax.ShapeDtypeStruct((m_pad, cout_p), out_dtype),
            compiler_params=cparams,
            cost_estimate=pl.CostEstimate(
                flops=3 * m_pad * cout_p, transcendentals=0,
                bytes_accessed=2 * m_pad * cout_p * out_bytes),
        )(y_raw, scale, shift)
    else:
        operands = [patches, w_mat]
        specs = [p_spec, w_spec]
        if cfg["use_bias"]:
            operands.append(layer["bias"])
            specs.append(v_spec)
        y = pl.pallas_call(
            _make_matmul_kernel(cfg["use_bias"], cfg["use_act"]),
            grid=grid,
            in_specs=specs,
            out_specs=o_spec,
            out_shape=jax.ShapeDtypeStruct((m_pad, cout_p), out_dtype),
            compiler_params=cparams,
            cost_estimate=pl.CostEstimate(flops=flops, transcendentals=0,
                                          bytes_accessed=bytes_accessed),
        )(*operands)

    return y[:m, :cout].reshape(n, hout, wout, cout)


# ----------------------------------------------------------------------------
# Parameters mirroring NLayerDiscriminator.__init__
# (norm_layer=nn.BatchNorm2d -> use_bias=False on normed convs,
#  use_sigmoid=False, dilation=1)
# ----------------------------------------------------------------------------
def init_params(key, input_nc, ndf=64, n_layers=3):
    cfgs = [dict(cin=input_nc, cout=ndf, stride=2,
                 use_bias=True, use_bn=False, use_act=True)]
    nf_mult = 1
    for nl in range(1, n_layers):
        nf_prev, nf_mult = nf_mult, min(2 ** nl, 8)
        cfgs.append(dict(cin=ndf * nf_prev, cout=ndf * nf_mult, stride=2,
                         use_bias=False, use_bn=True, use_act=True))
    nf_prev, nf_mult = nf_mult, min(2 ** n_layers, 8)
    cfgs.append(dict(cin=ndf * nf_prev, cout=ndf * nf_mult, stride=1,
                     use_bias=False, use_bn=True, use_act=True))
    cfgs.append(dict(cin=ndf * nf_mult, cout=1, stride=1,
                     use_bias=True, use_bn=False, use_act=False))

    layers = []
    for cfg in cfgs:
        key, wk, bk, gk, bek = jax.random.split(key, 5)
        cout, cin = cfg["cout"], cfg["cin"]
        cout_p = _round_up(cout, LANE)                 # lane-dense output channels
        # PyTorch Conv2d weight shape (Cout, Cin, KW, KW); repack to the
        # (KW, KW, Cin) -> Cout matmul layout matching the im2col column order.
        w_oihw = 0.02 * jax.random.normal(wk, (cout, cin, KW, KW), jnp.float32)
        w_mat = jnp.transpose(w_oihw, (2, 3, 1, 0)).reshape(KW * KW * cin, cout)
        w_mat = jnp.pad(w_mat, ((0, 0), (0, cout_p - cout))).astype(jnp.bfloat16)
        bias = 0.01 * jax.random.normal(bk, (cout,), jnp.float32)
        gamma = 1.0 + 0.1 * jax.random.normal(gk, (cout,), jnp.float32)
        beta = 0.1 * jax.random.normal(bek, (cout,), jnp.float32)
        layers.append(dict(
            cfg=cfg,
            # packed / padded tensors for the Pallas path
            w_mat=w_mat,
            bias=jnp.pad(bias, (0, cout_p - cout))[None, :],
            gamma=jnp.pad(gamma, (0, cout_p - cout)),
            beta=jnp.pad(beta, (0, cout_p - cout)),
            # unpadded f32 copies for the reference
            w_oihw=w_oihw, bias_ref=bias, gamma_ref=gamma, beta_ref=beta,
        ))
    return layers


def nlayer_discriminator_forward(layers, x_nchw):
    x = jnp.transpose(x_nchw, (0, 2, 3, 1)).astype(jnp.float32)   # NCHW -> NHWC
    last = len(layers) - 1
    for idx, layer in enumerate(layers):
        x = _conv_layer_pallas(x, layer, idx == last)
    return jnp.transpose(x, (0, 3, 1, 2))                          # back to NCHW


# ----------------------------------------------------------------------------
# Pure-JAX reference (lax.conv, same bf16-input / f32-accumulate / bf16
# intermediate-activation policy as the Pallas path)
# ----------------------------------------------------------------------------
def _reference_forward(layers, x_nchw):
    x = x_nchw.astype(jnp.float32)
    last = len(layers) - 1
    for idx, layer in enumerate(layers):
        cfg = layer["cfg"]
        y = jax.lax.conv_general_dilated(
            x.astype(jnp.bfloat16), layer["w_oihw"].astype(jnp.bfloat16),
            (cfg["stride"], cfg["stride"]), ((PADW, PADW), (PADW, PADW)),
            dimension_numbers=("NCHW", "OIHW", "NCHW"),
            preferred_element_type=jnp.float32)
        if cfg["use_bias"]:
            y = y + layer["bias_ref"].reshape(1, -1, 1, 1)
        if cfg["use_bn"]:
            mean = jnp.mean(y, axis=(0, 2, 3), keepdims=True)
            var = jnp.mean((y - mean) ** 2, axis=(0, 2, 3), keepdims=True)
            y = y.astype(jnp.bfloat16).astype(jnp.float32)   # y_raw stored as bf16
            y = (y - mean) * jax.lax.rsqrt(var + BN_EPS)
            y = (y * layer["gamma_ref"].reshape(1, -1, 1, 1)
                 + layer["beta_ref"].reshape(1, -1, 1, 1))
        if cfg["use_act"]:
            y = jnp.where(y >= 0.0, y, LRELU_SLOPE * y)
        if idx != last:
            y = y.astype(jnp.bfloat16).astype(jnp.float32)   # bf16 intermediates
        x = y
    return x


if __name__ == "__main__":
    key = jax.random.PRNGKey(0)
    key, pkey, xkey = jax.random.split(key, 3)

    input_nc, ndf, n_layers = 4, 8, 3
    layers = init_params(pkey, input_nc, ndf=ndf, n_layers=n_layers)

    # n_layers=3 => three stride-2 convs + two stride-1 convs; 32x32 keeps every
    # layer's spatial extent positive (32 -> 16 -> 8 -> 4 -> 3 -> 2). A 16x16
    # input would shrink to 0x0 at the final conv (the PyTorch module would
    # also fail there), which is what crashed the previous version.
    x = jax.random.normal(xkey, (2, input_nc, 32, 32), jnp.float32)

    fwd = jax.jit(functools.partial(nlayer_discriminator_forward, layers))
    out = jax.block_until_ready(fwd(x))

    # shape check: 32 -> 16 -> 8 -> 4 -> 3 -> 2 spatially, 1 output channel
    assert out.shape == (2, 1, 2, 2), out.shape

    ref = _reference_forward(layers, x)
    max_err = float(jnp.max(jnp.abs(out - ref)))
    # bf16 matmul inputs + bf16 intermediates (f32 accumulation) on both paths.
    assert jnp.allclose(out, ref, atol=3e-2, rtol=3e-2), max_err

    print("KERNEL_OK")
</pallas_src>

<mosaic_0001>
module attributes {stable_mosaic.version = 11 : i64} {
  func.func @kernel(%arg0: i32, %arg1: memref<512x64xbf16, #tpu.memory_space<vmem>>, %arg2: memref<64x128xbf16, #tpu.memory_space<vmem>>, %arg3: memref<1x128xf32, #tpu.memory_space<vmem>>, %arg4: memref<512x128xbf16, #tpu.memory_space<vmem>>) attributes {dimension_semantics = [#tpu.dimension_semantics<parallel>], iteration_bounds = array<i64: 1>, scalar_prefetch = 0 : i64, scratch_operands = 0 : i64, tpu.core_type = #tpu.core_type<tc>, window_params = [{transform_indices = @transform_0, window_bounds = array<i64: 512, 64>}, {pipeline_mode = #tpu.pipeline_mode<synchronous>, transform_indices = @transform_1, window_bounds = array<i64: 64, 128>}, {pipeline_mode = #tpu.pipeline_mode<synchronous>, transform_indices = @transform_2, window_bounds = array<i64: 1, 128>}, {transform_indices = @transform_3, window_bounds = array<i64: 512, 128>}]} {
    %c0 = arith.constant 0 : index
    %c0_0 = arith.constant 0 : index
    %0 = vector.load %arg1[%c0, %c0_0] : memref<512x64xbf16, #tpu.memory_space<vmem>>, vector<512x64xbf16>
    %c0_1 = arith.constant 0 : index
    %c0_2 = arith.constant 0 : index
    %1 = vector.load %arg2[%c0_1, %c0_2] : memref<64x128xbf16, #tpu.memory_space<vmem>>, vector<64x128xbf16>
    %cst = arith.constant dense<0.000000e+00> : vector<512x128xf32>
    %2 = tpu.matmul %0, %1, %cst {dimension_numbers = #tpu.dot_dimension_numbers<[1], [0], [0], [1], [0, 0, 1, 1], [], []>} : vector<512x64xbf16>, vector<64x128xbf16>, vector<512x128xf32> -> vector<512x128xf32>
    %c0_3 = arith.constant 0 : index
    %c0_4 = arith.constant 0 : index
    %3 = vector.load %arg3[%c0_3, %c0_4] : memref<1x128xf32, #tpu.memory_space<vmem>>, vector<1x128xf32>
    %4 = vector.broadcast %3 : vector<1x128xf32> to vector<512x128xf32>
    %5 = arith.addf %2, %4 : vector<512x128xf32>
    %cst_5 = arith.constant 0.000000e+00 : f32
    %6 = vector.broadcast %cst_5 : f32 to vector<512x128xf32>
    %7 = arith.cmpf oge, %5, %6 : vector<512x128xf32>
    %cst_6 = arith.constant 2.000000e-01 : f32
    %8 = vector.broadcast %cst_6 : f32 to vector<512x128xf32>
    %9 = arith.mulf %8, %5 : vector<512x128xf32>
    %10 = arith.select %7, %5, %9 : vector<512x128xi1>, vector<512x128xf32>
    %11 = arith.truncf %10 : vector<512x128xf32> to vector<512x128xbf16>
    %c0_7 = arith.constant 0 : index
    %c0_8 = arith.constant 0 : index
    %12 = vector.load %arg4[%c0_7, %c0_8] : memref<512x128xbf16, #tpu.memory_space<vmem>>, vector<512x128xbf16>
    tpu.vector_store %arg4[%c0_7, %c0_8], %11 {strides = array<i32>} : memref<512x128xbf16, #tpu.memory_space<vmem>>, vector<512x128xbf16>,
    return
  }
  func.func @transform_0(%arg0: i32) -> (i32, i32) {
    %c0_i32 = arith.constant 0 : i32
    %c0_i32_0 = arith.constant 0 : i32
    return %arg0, %c0_i32 : i32, i32
  }
  func.func @transform_1(%arg0: i32) -> (i32, i32) {
    %c0_i32 = arith.constant 0 : i32
    %c0_i32_0 = arith.constant 0 : i32
    %c0_i32_1 = arith.constant 0 : i32
    return %c0_i32, %c0_i32_0 : i32, i32
  }
  func.func @transform_2(%arg0: i32) -> (i32, i32) {
    %c0_i32 = arith.constant 0 : i32
    %c0_i32_0 = arith.constant 0 : i32
    %c0_i32_1 = arith.constant 0 : i32
    return %c0_i32, %c0_i32_0 : i32, i32
  }
  func.func @transform_3(%arg0: i32) -> (i32, i32) {
    %c0_i32 = arith.constant 0 : i32
    %c0_i32_0 = arith.constant 0 : i32
    return %arg0, %c0_i32 : i32, i32
  }
}

module attributes {stable_mosaic.version = 11 : i64} {
  func.func @kernel(%arg0: i32, %arg1: memref<128x128xbf16, #tpu.memory_space<vmem>>, %arg2: memref<128x128xbf16, #tpu.memory_space<vmem>>, %arg3: memref<128x128xbf16, #tpu.memory_space<vmem>>, %arg4: memref<1x2x128xf32, #tpu.memory_space<vmem>>) attributes {dimension_semantics = [#tpu.dimension_semantics<parallel>], iteration_bounds = array<i64: 1>, scalar_prefetch = 0 : i64, scratch_operands = 0 : i64, tpu.core_type = #tpu.core_type<tc>, window_params = [{transform_indices = @transform_0, window_bounds = array<i64: 128, 128>}, {pipeline_mode = #tpu.pipeline_mode<synchronous>, transform_indices = @transform_1, window_bounds = array<i64: 128, 128>}, {transform_indices = @transform_2, window_bounds = array<i64: 128, 128>}, {transform_indices = @transform_3, window_bounds = array<i64: 1, 2, 128>}]} {
    %c0 = arith.constant 0 : index
    %c0_0 = arith.constant 0 : index
    %0 = vector.load %arg1[%c0, %c0_0] : memref<128x128xbf16, #tpu.memory_space<vmem>>, vector<128x128xbf16>
    %c0_1 = arith.constant 0 : index
    %c0_2 = arith.constant 0 : index
    %1 = vector.load %arg2[%c0_1, %c0_2] : memref<128x128xbf16, #tpu.memory_space<vmem>>, vector<128x128xbf16>
    %cst = arith.constant dense<0.000000e+00> : vector<128x128xf32>
    %2 = tpu.matmul %0, %1, %cst {dimension_numbers = #tpu.dot_dimension_numbers<[1], [0], [0], [1], [0, 0, 1, 1], [], []>} : vector<128x128xbf16>, vector<128x128xbf16>, vector<128x128xf32> -> vector<128x128xf32>
    %c128_i32 = arith.constant 128 : i32
    %3 = arith.muli %arg0, %c128_i32 : i32
    %4 = tpu.iota {dimensions = array<i32: 0>} : vector<128x1xi32>
    %5 = vector.broadcast %3 : i32 to vector<128x1xi32>
    %6 = arith.addi %5, %4 : vector<128x1xi32>
    %c128_i32_3 = arith.constant 128 : i32
    %7 = vector.broadcast %c128_i32_3 : i32 to vector<128x1xi32>
    %8 = arith.cmpi slt, %6, %7 : vector<128x1xi32>
    %cst_4 = arith.constant 0.000000e+00 : f32
    %9 = vector.shape_cast %8 : vector<128x1xi1> to vector<128x1xi1>
    %10 = vector.broadcast %9 : vector<128x1xi1> to vector<128x128xi1>
    %11 = vector.broadcast %cst_4 : f32 to vector<128x128xf32>
    %12 = arith.select %10, %2, %11 : vector<128x128xi1>, vector<128x128xf32>
    %cst_5 = arith.constant dense<0.000000e+00> : vector<128xf32>
    %13 = vector.multi_reduction <add>, %12, %cst_5 [0] : vector<128x128xf32> to vector<128xf32>
    %14 = vector.shape_cast %13 : vector<128xf32> to vector<1x128xf32>
    %15 = arith.mulf %12, %12 : vector<128x128xf32>
    %cst_6 = arith.constant dense<0.000000e+00> : vector<128xf32>
    %16 = vector.multi_reduction <add>, %15, %cst_6 [0] : vector<128x128xf32> to vector<128xf32>
    %17 = vector.shape_cast %16 : vector<128xf32> to vector<1x128xf32>
    %18 = tpu.concatenate %14, %17 in 0 : vector<1x128xf32>, vector<1x128xf32> -> vector<2x128xf32>
    %19 = vector.shape_cast %18 : vector<2x128xf32> to vector<1x2x128xf32>
    %c0_7 = arith.constant 0 : index
    %c0_8 = arith.constant 0 : index
    %c0_9 = arith.constant 0 : index
    %20 = vector.load %arg4[%c0_7, %c0_8, %c0_9] : memref<1x2x128xf32, #tpu.memory_space<vmem>>, vector<1x2x128xf32>
    tpu.vector_store %arg4[%c0_7, %c0_8, %c0_9], %19 {strides = array<i32>} : memref<1x2x128xf32, #tpu.memory_space<vmem>>, vector<1x2x128xf32>,
    %21 = arith.truncf %2 : vector<128x128xf32> to vector<128x128xbf16>
    %c0_10 = arith.constant 0 : index
    %c0_11 = arith.constant 0 : index
    %22 = vector.load %arg3[%c0_10, %c0_11] : memref<128x128xbf16, #tpu.memory_space<vmem>>, vector<128x128xbf16>
    tpu.vector_store %arg3[%c0_10, %c0_11], %21 {strides = array<i32>} : memref<128x128xbf16, #tpu.memory_space<vmem>>, vector<128x128xbf16>,
    return
  }
  func.func @transform_0(%arg0: i32) -> (i32, i32) {
    %c0_i32 = arith.constant 0 : i32
    %c0_i32_0 = arith.constant 0 : i32
    return %arg0, %c0_i32 : i32, i32
  }
  func.func @transform_1(%arg0: i32) -> (i32, i32) {
    %c0_i32 = arith.constant 0 : i32
    %c0_i32_0 = arith.constant 0 : i32
    %c0_i32_1 = arith.constant 0 : i32
    return %c0_i32, %c0_i32_0 : i32, i32
  }
  func.func @transform_2(%arg0: i32) -> (i32, i32) {
    %c0_i32 = arith.constant 0 : i32
    %c0_i32_0 = arith.constant 0 : i32
    return %arg0, %c0_i32 : i32, i32
  }
  func.func @transform_3(%arg0: i32) -> (i32, i32, i32) {
    %c0_i32 = arith.constant 0 : i32
    %c0_i32_0 = arith.constant 0 : i32
    %c0_i32_1 = arith.constant 0 : i32
    return %arg0, %c0_i32, %c0_i32_0 : i32, i32, i32
  }
}

module attributes {stable_mosaic.version = 11 : i64} {
  func.func @_bn_act_kernel(%arg0: i32, %arg1: memref<128x128xbf16, #tpu.memory_space<vmem>>, %arg2: memref<1x128xf32, #tpu.memory_space<vmem>>, %arg3: memref<1x128xf32, #tpu.memory_space<vmem>>, %arg4: memref<128x128xbf16, #tpu.memory_space<vmem>>) attributes {dimension_semantics = [#tpu.dimension_semantics<parallel>], iteration_bounds = array<i64: 1>, scalar_prefetch = 0 : i64, scratch_operands = 0 : i64, tpu.core_type = #tpu.core_type<tc>, window_params = [{transform_indices = @transform_0, window_bounds = array<i64: 128, 128>}, {pipeline_mode = #tpu.pipeline_mode<synchronous>, transform_indices = @transform_1, window_bounds = array<i64: 1, 128>}, {pipeline_mode = #tpu.pipeline_mode<synchronous>, transform_indices = @transform_2, window_bounds = array<i64: 1, 128>}, {transform_indices = @transform_3, window_bounds = array<i64: 128, 128>}]} {
    %c0 = arith.constant 0 : index
    %c0_0 = arith.constant 0 : index
    %0 = vector.load %arg1[%c0, %c0_0] : memref<128x128xbf16, #tpu.memory_space<vmem>>, vector<128x128xbf16>
    %1 = arith.extf %0 : vector<128x128xbf16> to vector<128x128xf32>
    %c0_1 = arith.constant 0 : index
    %c0_2 = arith.constant 0 : index
    %2 = vector.load %arg2[%c0_1, %c0_2] : memref<1x128xf32, #tpu.memory_space<vmem>>, vector<1x128xf32>
    %3 = vector.broadcast %2 : vector<1x128xf32> to vector<128x128xf32>
    %4 = arith.mulf %1, %3 : vector<128x128xf32>
    %c0_3 = arith.constant 0 : index
    %c0_4 = arith.constant 0 : index
    %5 = vector.load %arg3[%c0_3, %c0_4] : memref<1x128xf32, #tpu.memory_space<vmem>>, vector<1x128xf32>
    %6 = vector.broadcast %5 : vector<1x128xf32> to vector<128x128xf32>
    %7 = arith.addf %4, %6 : vector<128x128xf32>
    %cst = arith.constant 0.000000e+00 : f32
    %8 = vector.broadcast %cst : f32 to vector<128x128xf32>
    %9 = arith.cmpf oge, %7, %8 : vector<128x128xf32>
    %cst_5 = arith.constant 2.000000e-01 : f32
    %10 = vector.broadcast %cst_5 : f32 to vector<128x128xf32>
    %11 = arith.mulf %10, %7 : vector<128x128xf32>
    %12 = arith.select %9, %7, %11 : vector<128x128xi1>, vector<128x128xf32>
    %13 = arith.truncf %12 : vector<128x128xf32> to vector<128x128xbf16>
    %c0_6 = arith.constant 0 : index
    %c0_7 = arith.constant 0 : index
    %14 = vector.load %arg4[%c0_6, %c0_7] : memref<128x128xbf16, #tpu.memory_space<vmem>>, vector<128x128xbf16>
    tpu.vector_store %arg4[%c0_6, %c0_7], %13 {strides = array<i32>} : memref<128x128xbf16, #tpu.memory_space<vmem>>, vector<128x128xbf16>,
    return
  }
  func.func @transform_0(%arg0: i32) -> (i32, i32) {
    %c0_i32 = arith.constant 0 : i32
    %c0_i32_0 = arith.constant 0 : i32
    return %arg0, %c0_i32 : i32, i32
  }
  func.func @transform_1(%arg0: i32) -> (i32, i32) {
    %c0_i32 = arith.constant 0 : i32
    %c0_i32_0 = arith.constant 0 : i32
    %c0_i32_1 = arith.constant 0 : i32
    return %c0_i32, %c0_i32_0 : i32, i32
  }
  func.func @transform_2(%arg0: i32) -> (i32, i32) {
    %c0_i32 = arith.constant 0 : i32
    %c0_i32_0 = arith.constant 0 : i32
    %c0_i32_1 = arith.constant 0 : i32
    return %c0_i32, %c0_i32_0 : i32, i32
  }
  func.func @transform_3(%arg0: i32) -> (i32, i32) {
    %c0_i32 = arith.constant 0 : i32
    %c0_i32_0 = arith.constant 0 : i32
    return %arg0, %c0_i32 : i32, i32
  }
}

module attributes {stable_mosaic.version = 11 : i64} {
  func.func @kernel(%arg0: i32, %arg1: memref<32x256xbf16, #tpu.memory_space<vmem>>, %arg2: memref<256x128xbf16, #tpu.memory_space<vmem>>, %arg3: memref<32x128xbf16, #tpu.memory_space<vmem>>, %arg4: memref<1x2x128xf32, #tpu.memory_space<vmem>>) attributes {dimension_semantics = [#tpu.dimension_semantics<parallel>], iteration_bounds = array<i64: 1>, scalar_prefetch = 0 : i64, scratch_operands = 0 : i64, tpu.core_type = #tpu.core_type<tc>, window_params = [{transform_indices = @transform_0, window_bounds = array<i64: 32, 256>}, {pipeline_mode = #tpu.pipeline_mode<synchronous>, transform_indices = @transform_1, window_bounds = array<i64: 256, 128>}, {transform_indices = @transform_2, window_bounds = array<i64: 32, 128>}, {transform_indices = @transform_3, window_bounds = array<i64: 1, 2, 128>}]} {
    %c0 = arith.constant 0 : index
    %c0_0 = arith.constant 0 : index
    %0 = vector.load %arg1[%c0, %c0_0] : memref<32x256xbf16, #tpu.memory_space<vmem>>, vector<32x256xbf16>
    %c0_1 = arith.constant 0 : index
    %c0_2 = arith.constant 0 : index
    %1 = vector.load %arg2[%c0_1, %c0_2] : memref<256x128xbf16, #tpu.memory_space<vmem>>, vector<256x128xbf16>
    %cst = arith.constant dense<0.000000e+00> : vector<32x128xf32>
    %2 = tpu.matmul %0, %1, %cst {dimension_numbers = #tpu.dot_dimension_numbers<[1], [0], [0], [1], [0, 0, 1, 1], [], []>} : vector<32x256xbf16>, vector<256x128xbf16>, vector<32x128xf32> -> vector<32x128xf32>
    %c32_i32 = arith.constant 32 : i32
    %3 = arith.muli %arg0, %c32_i32 : i32
    %4 = tpu.iota {dimensions = array<i32: 0>} : vector<32x1xi32>
    %5 = vector.broadcast %3 : i32 to vector<32x1xi32>
    %6 = arith.addi %5, %4 : vector<32x1xi32>
    %c32_i32_3 = arith.constant 32 : i32
    %7 = vector.broadcast %c32_i32_3 : i32 to vector<32x1xi32>
    %8 = arith.cmpi slt, %6, %7 : vector<32x1xi32>
    %cst_4 = arith.constant 0.000000e+00 : f32
    %9 = vector.shape_cast %8 : vector<32x1xi1> to vector<32x1xi1>
    %10 = vector.broadcast %9 : vector<32x1xi1> to vector<32x128xi1>
    %11 = vector.broadcast %cst_4 : f32 to vector<32x128xf32>
    %12 = arith.select %10, %2, %11 : vector<32x128xi1>, vector<32x128xf32>
    %cst_5 = arith.constant dense<0.000000e+00> : vector<128xf32>
    %13 = vector.multi_reduction <add>, %12, %cst_5 [0] : vector<32x128xf32> to vector<128xf32>
    %14 = vector.shape_cast %13 : vector<128xf32> to vector<1x128xf32>
    %15 = arith.mulf %12, %12 : vector<32x128xf32>
    %cst_6 = arith.constant dense<0.000000e+00> : vector<128xf32>
    %16 = vector.multi_reduction <add>, %15, %cst_6 [0] : vector<32x128xf32> to vector<128xf32>
    %17 = vector.shape_cast %16 : vector<128xf32> to vector<1x128xf32>
    %18 = tpu.concatenate %14, %17 in 0 : vector<1x128xf32>, vector<1x128xf32> -> vector<2x128xf32>
    %19 = vector.shape_cast %18 : vector<2x128xf32> to vector<1x2x128xf32>
    %c0_7 = arith.constant 0 : index
    %c0_8 = arith.constant 0 : index
    %c0_9 = arith.constant 0 : index
    %20 = vector.load %arg4[%c0_7, %c0_8, %c0_9] : memref<1x2x128xf32, #tpu.memory_space<vmem>>, vector<1x2x128xf32>
    tpu.vector_store %arg4[%c0_7, %c0_8, %c0_9], %19 {strides = array<i32>} : memref<1x2x128xf32, #tpu.memory_space<vmem>>, vector<1x2x128xf32>,
    %21 = arith.truncf %2 : vector<32x128xf32> to vector<32x128xbf16>
    %c0_10 = arith.constant 0 : index
    %c0_11 = arith.constant 0 : index
    %22 = vector.load %arg3[%c0_10, %c0_11] : memref<32x128xbf16, #tpu.memory_space<vmem>>, vector<32x128xbf16>
    tpu.vector_store %arg3[%c0_10, %c0_11], %21 {strides = array<i32>} : memref<32x128xbf16, #tpu.memory_space<vmem>>, vector<32x128xbf16>,
    return
  }
  func.func @transform_0(%arg0: i32) -> (i32, i32) {
    %c0_i32 = arith.constant 0 : i32
    %c0_i32_0 = arith.constant 0 : i32
    return %arg0, %c0_i32 : i32, i32
  }
  func.func @transform_1(%arg0: i32) -> (i32, i32) {
    %c0_i32 = arith.constant 0 : i32
    %c0_i32_0 = arith.constant 0 : i32
    %c0_i32_1 = arith.constant 0 : i32
    return %c0_i32, %c0_i32_0 : i32, i32
  }
  func.func @transform_2(%arg0: i32) -> (i32, i32) {
    %c0_i32 = arith.constant 0 : i32
    %c0_i32_0 = arith.constant 0 : i32
    return %arg0, %c0_i32 : i32, i32
  }
  func.func @transform_3(%arg0: i32) -> (i32, i32, i32) {
    %c0_i32 = arith.constant 0 : i32
    %c0_i32_0 = arith.constant 0 : i32
    %c0_i32_1 = arith.constant 0 : i32
    return %arg0, %c0_i32, %c0_i32_0 : i32, i32, i32
  }
}

module attributes {stable_mosaic.version = 11 : i64} {
  func.func @_bn_act_kernel(%arg0: i32, %arg1: memref<32x128xbf16, #tpu.memory_space<vmem>>, %arg2: memref<1x128xf32, #tpu.memory_space<vmem>>, %arg3: memref<1x128xf32, #tpu.memory_space<vmem>>, %arg4: memref<32x128xbf16, #tpu.memory_space<vmem>>) attributes {dimension_semantics = [#tpu.dimension_semantics<parallel>], iteration_bounds = array<i64: 1>, scalar_prefetch = 0 : i64, scratch_operands = 0 : i64, tpu.core_type = #tpu.core_type<tc>, window_params = [{transform_indices = @transform_0, window_bounds = array<i64: 32, 128>}, {pipeline_mode = #tpu.pipeline_mode<synchronous>, transform_indices = @transform_1, window_bounds = array<i64: 1, 128>}, {pipeline_mode = #tpu.pipeline_mode<synchronous>, transform_indices = @transform_2, window_bounds = array<i64: 1, 128>}, {transform_indices = @transform_3, window_bounds = array<i64: 32, 128>}]} {
    %c0 = arith.constant 0 : index
    %c0_0 = arith.constant 0 : index
    %0 = vector.load %arg1[%c0, %c0_0] : memref<32x128xbf16, #tpu.memory_space<vmem>>, vector<32x128xbf16>
    %1 = arith.extf %0 : vector<32x128xbf16> to vector<32x128xf32>
    %c0_1 = arith.constant 0 : index
    %c0_2 = arith.constant 0 : index
    %2 = vector.load %arg2[%c0_1, %c0_2] : memref<1x128xf32, #tpu.memory_space<vmem>>, vector<1x128xf32>
    %3 = vector.broadcast %2 : vector<1x128xf32> to vector<32x128xf32>
    %4 = arith.mulf %1, %3 : vector<32x128xf32>
    %c0_3 = arith.constant 0 : index
    %c0_4 = arith.constant 0 : index
    %5 = vector.load %arg3[%c0_3, %c0_4] : memref<1x128xf32, #tpu.memory_space<vmem>>, vector<1x128xf32>
    %6 = vector.broadcast %5 : vector<1x128xf32> to vector<32x128xf32>
    %7 = arith.addf %4, %6 : vector<32x128xf32>
    %cst = arith.constant 0.000000e+00 : f32
    %8 = vector.broadcast %cst : f32 to vector<32x128xf32>
    %9 = arith.cmpf oge, %7, %8 : vector<32x128xf32>
    %cst_5 = arith.constant 2.000000e-01 : f32
    %10 = vector.broadcast %cst_5 : f32 to vector<32x128xf32>
    %11 = arith.mulf %10, %7 : vector<32x128xf32>
    %12 = arith.select %9, %7, %11 : vector<32x128xi1>, vector<32x128xf32>
    %13 = arith.truncf %12 : vector<32x128xf32> to vector<32x128xbf16>
    %c0_6 = arith.constant 0 : index
    %c0_7 = arith.constant 0 : index
    %14 = vector.load %arg4[%c0_6, %c0_7] : memref<32x128xbf16, #tpu.memory_space<vmem>>, vector<32x128xbf16>
    tpu.vector_store %arg4[%c0_6, %c0_7], %13 {strides = array<i32>} : memref<32x128xbf16, #tpu.memory_space<vmem>>, vector<32x128xbf16>,
    return
  }
  func.func @transform_0(%arg0: i32) -> (i32, i32) {
    %c0_i32 = arith.constant 0 : i32
    %c0_i32_0 = arith.constant 0 : i32
    return %arg0, %c0_i32 : i32, i32
  }
  func.func @transform_1(%arg0: i32) -> (i32, i32) {
    %c0_i32 = arith.constant 0 : i32
    %c0_i32_0 = arith.constant 0 : i32
    %c0_i32_1 = arith.constant 0 : i32
    return %c0_i32, %c0_i32_0 : i32, i32
  }
  func.func @transform_2(%arg0: i32) -> (i32, i32) {
    %c0_i32 = arith.constant 0 : i32
    %c0_i32_0 = arith.constant 0 : i32
    %c0_i32_1 = arith.constant 0 : i32
    return %c0_i32, %c0_i32_0 : i32, i32
  }
  func.func @transform_3(%arg0: i32) -> (i32, i32) {
    %c0_i32 = arith.constant 0 : i32
    %c0_i32_0 = arith.constant 0 : i32
    return %arg0, %c0_i32 : i32, i32
  }
}

module attributes {stable_mosaic.version = 11 : i64} {
  func.func @kernel(%arg0: i32, %arg1: memref<24x512xbf16, #tpu.memory_space<vmem>>, %arg2: memref<512x128xbf16, #tpu.memory_space<vmem>>, %arg3: memref<24x128xbf16, #tpu.memory_space<vmem>>, %arg4: memref<1x2x128xf32, #tpu.memory_space<vmem>>) attributes {dimension_semantics = [#tpu.dimension_semantics<parallel>], iteration_bounds = array<i64: 1>, scalar_prefetch = 0 : i64, scratch_operands = 0 : i64, tpu.core_type = #tpu.core_type<tc>, window_params = [{transform_indices = @transform_0, window_bounds = array<i64: 24, 512>}, {pipeline_mode = #tpu.pipeline_mode<synchronous>, transform_indices = @transform_1, window_bounds = array<i64: 512, 128>}, {transform_indices = @transform_2, window_bounds = array<i64: 24, 128>}, {transform_indices = @transform_3, window_bounds = array<i64: 1, 2, 128>}]} {
    %c0 = arith.constant 0 : index
    %c0_0 = arith.constant 0 : index
    %0 = vector.load %arg1[%c0, %c0_0] : memref<24x512xbf16, #tpu.memory_space<vmem>>, vector<24x512xbf16>
    %c0_1 = arith.constant 0 : index
    %c0_2 = arith.constant 0 : index
    %1 = vector.load %arg2[%c0_1, %c0_2] : memref<512x128xbf16, #tpu.memory_space<vmem>>, vector<512x128xbf16>
    %cst = arith.constant dense<0.000000e+00> : vector<24x128xf32>
    %2 = tpu.matmul %0, %1, %cst {dimension_numbers = #tpu.dot_dimension_numbers<[1], [0], [0], [1], [0, 0, 1, 1], [], []>} : vector<24x512xbf16>, vector<512x128xbf16>, vector<24x128xf32> -> vector<24x128xf32>
    %c24_i32 = arith.constant 24 : i32
    %3 = arith.muli %arg0, %c24_i32 : i32
    %4 = tpu.iota {dimensions = array<i32: 0>} : vector<24x1xi32>
    %5 = vector.broadcast %3 : i32 to vector<24x1xi32>
    %6 = arith.addi %5, %4 : vector<24x1xi32>
    %c18_i32 = arith.constant 18 : i32
    %7 = vector.broadcast %c18_i32 : i32 to vector<24x1xi32>
    %8 = arith.cmpi slt, %6, %7 : vector<24x1xi32>
    %cst_3 = arith.constant 0.000000e+00 : f32
    %9 = vector.shape_cast %8 : vector<24x1xi1> to vector<24x1xi1>
    %10 = vector.broadcast %9 : vector<24x1xi1> to vector<24x128xi1>
    %11 = vector.broadcast %cst_3 : f32 to vector<24x128xf32>
    %12 = arith.select %10, %2, %11 : vector<24x128xi1>, vector<24x128xf32>
    %cst_4 = arith.constant dense<0.000000e+00> : vector<128xf32>
    %13 = vector.multi_reduction <add>, %12, %cst_4 [0] : vector<24x128xf32> to vector<128xf32>
    %14 = vector.shape_cast %13 : vector<128xf32> to vector<1x128xf32>
    %15 = arith.mulf %12, %12 : vector<24x128xf32>
    %cst_5 = arith.constant dense<0.000000e+00> : vector<128xf32>
    %16 = vector.multi_reduction <add>, %15, %cst_5 [0] : vector<24x128xf32> to vector<128xf32>
    %17 = vector.shape_cast %16 : vector<128xf32> to vector<1x128xf32>
    %18 = tpu.concatenate %14, %17 in 0 : vector<1x128xf32>, vector<1x128xf32> -> vector<2x128xf32>
    %19 = vector.shape_cast %18 : vector<2x128xf32> to vector<1x2x128xf32>
    %c0_6 = arith.constant 0 : index
    %c0_7 = arith.constant 0 : index
    %c0_8 = arith.constant 0 : index
    %20 = vector.load %arg4[%c0_6, %c0_7, %c0_8] : memref<1x2x128xf32, #tpu.memory_space<vmem>>, vector<1x2x128xf32>
    tpu.vector_store %arg4[%c0_6, %c0_7, %c0_8], %19 {strides = array<i32>} : memref<1x2x128xf32, #tpu.memory_space<vmem>>, vector<1x2x128xf32>,
    %21 = arith.truncf %2 : vector<24x128xf32> to vector<24x128xbf16>
    %c0_9 = arith.constant 0 : index
    %c0_10 = arith.constant 0 : index
    %22 = vector.load %arg3[%c0_9, %c0_10] : memref<24x128xbf16, #tpu.memory_space<vmem>>, vector<24x128xbf16>
    tpu.vector_store %arg3[%c0_9, %c0_10], %21 {strides = array<i32>} : memref<24x128xbf16, #tpu.memory_space<vmem>>, vector<24x128xbf16>,
    return
  }
  func.func @transform_0(%arg0: i32) -> (i32, i32) {
    %c0_i32 = arith.constant 0 : i32
    %c0_i32_0 = arith.constant 0 : i32
    return %arg0, %c0_i32 : i32, i32
  }
  func.func @transform_1(%arg0: i32) -> (i32, i32) {
    %c0_i32 = arith.constant 0 : i32
    %c0_i32_0 = arith.constant 0 : i32
    %c0_i32_1 = arith.constant 0 : i32
    return %c0_i32, %c0_i32_0 : i32, i32
  }
  func.func @transform_2(%arg0: i32) -> (i32, i32) {
    %c0_i32 = arith.constant 0 : i32
    %c0_i32_0 = arith.constant 0 : i32
    return %arg0, %c0_i32 : i32, i32
  }
  func.func @transform_3(%arg0: i32) -> (i32, i32, i32) {
    %c0_i32 = arith.constant 0 : i32
    %c0_i32_0 = arith.constant 0 : i32
    %c0_i32_1 = arith.constant 0 : i32
    return %arg0, %c0_i32, %c0_i32_0 : i32, i32, i32
  }
}

module attributes {stable_mosaic.version = 11 : i64} {
  func.func @_bn_act_kernel(%arg0: i32, %arg1: memref<24x128xbf16, #tpu.memory_space<vmem>>, %arg2: memref<1x128xf32, #tpu.memory_space<vmem>>, %arg3: memref<1x128xf32, #tpu.memory_space<vmem>>, %arg4: memref<24x128xbf16, #tpu.memory_space<vmem>>) attributes {dimension_semantics = [#tpu.dimension_semantics<parallel>], iteration_bounds = array<i64: 1>, scalar_prefetch = 0 : i64, scratch_operands = 0 : i64, tpu.core_type = #tpu.core_type<tc>, window_params = [{transform_indices = @transform_0, window_bounds = array<i64: 24, 128>}, {pipeline_mode = #tpu.pipeline_mode<synchronous>, transform_indices = @transform_1, window_bounds = array<i64: 1, 128>}, {pipeline_mode = #tpu.pipeline_mode<synchronous>, transform_indices = @transform_2, window_bounds = array<i64: 1, 128>}, {transform_indices = @transform_3, window_bounds = array<i64: 24, 128>}]} {
    %c0 = arith.constant 0 : index
    %c0_0 = arith.constant 0 : index
    %0 = vector.load %arg1[%c0, %c0_0] : memref<24x128xbf16, #tpu.memory_space<vmem>>, vector<24x128xbf16>
    %1 = arith.extf %0 : vector<24x128xbf16> to vector<24x128xf32>
    %c0_1 = arith.constant 0 : index
    %c0_2 = arith.constant 0 : index
    %2 = vector.load %arg2[%c0_1, %c0_2] : memref<1x128xf32, #tpu.memory_space<vmem>>, vector<1x128xf32>
    %3 = vector.broadcast %2 : vector<1x128xf32> to vector<24x128xf32>
    %4 = arith.mulf %1, %3 : vector<24x128xf32>
    %c0_3 = arith.constant 0 : index
    %c0_4 = arith.constant 0 : index
    %5 = vector.load %arg3[%c0_3, %c0_4] : memref<1x128xf32, #tpu.memory_space<vmem>>, vector<1x128xf32>
    %6 = vector.broadcast %5 : vector<1x128xf32> to vector<24x128xf32>
    %7 = arith.addf %4, %6 : vector<24x128xf32>
    %cst = arith.constant 0.000000e+00 : f32
    %8 = vector.broadcast %cst : f32 to vector<24x128xf32>
    %9 = arith.cmpf oge, %7, %8 : vector<24x128xf32>
    %cst_5 = arith.constant 2.000000e-01 : f32
    %10 = vector.broadcast %cst_5 : f32 to vector<24x128xf32>
    %11 = arith.mulf %10, %7 : vector<24x128xf32>
    %12 = arith.select %9, %7, %11 : vector<24x128xi1>, vector<24x128xf32>
    %13 = arith.truncf %12 : vector<24x128xf32> to vector<24x128xbf16>
    %c0_6 = arith.constant 0 : index
    %c0_7 = arith.constant 0 : index
    %14 = vector.load %arg4[%c0_6, %c0_7] : memref<24x128xbf16, #tpu.memory_space<vmem>>, vector<24x128xbf16>
    tpu.vector_store %arg4[%c0_6, %c0_7], %13 {strides = array<i32>} : memref<24x128xbf16, #tpu.memory_space<vmem>>, vector<24x128xbf16>,
    return
  }
  func.func @transform_0(%arg0: i32) -> (i32, i32) {
    %c0_i32 = arith.constant 0 : i32
    %c0_i32_0 = arith.constant 0 : i32
    return %arg0, %c0_i32 : i32, i32
  }
  func.func @transform_1(%arg0: i32) -> (i32, i32) {
    %c0_i32 = arith.constant 0 : i32
    %c0_i32_0 = arith.constant 0 : i32
    %c0_i32_1 = arith.constant 0 : i32
    return %c0_i32, %c0_i32_0 : i32, i32
  }
  func.func @transform_2(%arg0: i32) -> (i32, i32) {
    %c0_i32 = arith.constant 0 : i32
    %c0_i32_0 = arith.constant 0 : i32
    %c0_i32_1 = arith.constant 0 : i32
    return %c0_i32, %c0_i32_0 : i32, i32
  }
  func.func @transform_3(%arg0: i32) -> (i32, i32) {
    %c0_i32 = arith.constant 0 : i32
    %c0_i32_0 = arith.constant 0 : i32
    return %arg0, %c0_i32 : i32, i32
  }
}

module attributes {stable_mosaic.version = 11 : i64} {
  func.func @kernel(%arg0: i32, %arg1: memref<8x1024xbf16, #tpu.memory_space<vmem>>, %arg2: memref<1024x128xbf16, #tpu.memory_space<vmem>>, %arg3: memref<1x128xf32, #tpu.memory_space<vmem>>, %arg4: memref<8x128xf32, #tpu.memory_space<vmem>>) attributes {dimension_semantics = [#tpu.dimension_semantics<parallel>], iteration_bounds = array<i64: 1>, scalar_prefetch = 0 : i64, scratch_operands = 0 : i64, tpu.core_type = #tpu.core_type<tc>, window_params = [{transform_indices = @transform_0, window_bounds = array<i64: 8, 1024>}, {pipeline_mode = #tpu.pipeline_mode<synchronous>, transform_indices = @transform_1, window_bounds = array<i64: 1024, 128>}, {pipeline_mode = #tpu.pipeline_mode<synchronous>, transform_indices = @transform_2, window_bounds = array<i64: 1, 128>}, {transform_indices = @transform_3, window_bounds = array<i64: 8, 128>}]} {
    %c0 = arith.constant 0 : index
    %c0_0 = arith.constant 0 : index
    %0 = vector.load %arg1[%c0, %c0_0] : memref<8x1024xbf16, #tpu.memory_space<vmem>>, vector<8x1024xbf16>
    %c0_1 = arith.constant 0 : index
    %c0_2 = arith.constant 0 : index
    %1 = vector.load %arg2[%c0_1, %c0_2] : memref<1024x128xbf16, #tpu.memory_space<vmem>>, vector<1024x128xbf16>
    %cst = arith.constant dense<0.000000e+00> : vector<8x128xf32>
    %2 = tpu.matmul %0, %1, %cst {dimension_numbers = #tpu.dot_dimension_numbers<[1], [0], [0], [1], [0, 0, 1, 1], [], []>} : vector<8x1024xbf16>, vector<1024x128xbf16>, vector<8x128xf32> -> vector<8x128xf32>
    %c0_3 = arith.constant 0 : index
    %c0_4 = arith.constant 0 : index
    %3 = vector.load %arg3[%c0_3, %c0_4] : memref<1x128xf32, #tpu.memory_space<vmem>>, vector<1x128xf32>
    %4 = vector.broadcast %3 : vector<1x128xf32> to vector<8x128xf32>
    %5 = arith.addf %2, %4 : vector<8x128xf32>
    %c0_5 = arith.constant 0 : index
    %c0_6 = arith.constant 0 : index
    %6 = vector.load %arg4[%c0_5, %c0_6] : memref<8x128xf32, #tpu.memory_space<vmem>>, vector<8x128xf32>
    tpu.vector_store %arg4[%c0_5, %c0_6], %5 {strides = array<i32>} : memref<8x128xf32, #tpu.memory_space<vmem>>, vector<8x128xf32>,
    return
  }
  func.func @transform_0(%arg0: i32) -> (i32, i32) {
    %c0_i32 = arith.constant 0 : i32
    %c0_i32_0 = arith.constant 0 : i32
    return %arg0, %c0_i32 : i32, i32
  }
  func.func @transform_1(%arg0: i32) -> (i32, i32) {
    %c0_i32 = arith.constant 0 : i32
    %c0_i32_0 = arith.constant 0 : i32
    %c0_i32_1 = arith.constant 0 : i32
    return %c0_i32, %c0_i32_0 : i32, i32
  }
  func.func @transform_2(%arg0: i32) -> (i32, i32) {
    %c0_i32 = arith.constant 0 : i32
    %c0_i32_0 = arith.constant 0 : i32
    %c0_i32_1 = arith.constant 0 : i32
    return %c0_i32, %c0_i32_0 : i32, i32
  }
  func.func @transform_3(%arg0: i32) -> (i32, i32) {
    %c0_i32 = arith.constant 0 : i32
    %c0_i32_0 = arith.constant 0 : i32
    return %arg0, %c0_i32 : i32, i32
  }
}

</mosaic_0001>

<bundles_post_ra>
// kernel: nlayer_discriminator_forward.8
= control target key start
LH: loop header
LB: loop body
LE: loop exit
PB: predicated region body
PF: predicated region fallthrough
CT: control target
= control target key end

     0   :  { %vm278_vm0 = vcmask 523264   ;;  %s2054_s1 = inlined_call_operand.vmem [shape: bf16[64,128], index: 1, kind: input, shape index: {}]   ;;  %s2055_s0 = inlined_call_operand.vmem [shape: bf16[512,64], index: 0, kind: input, shape index: {}]   ;;  %s2056_s2 = inlined_call_operand.vmem [shape: f32[1,128], index: 2, kind: input, shape index: {}]   ;;  %s2057_s3 = inlined_call_operand.vmem [shape: bf16[512,128], index: 3, kind: output, shape index: {}]  }
   0x1   :  { %v1684_v0 = vld [vmem:[%s2054_s1] sm:$0xff]   ;;  %v1685_v1 = vld [vmem:[%s2054_s1 + $0x8] sm:$0xff]   ;;  %v1686_v2 = vld [vmem:[%s2054_s1 + $0x10] sm:$0xff]  }
   0x2   :  { %1604 = vmatprep.subr.bf16.mxu0 %v1684_v0  ;;  %1676 = vmatprep.subr.bf16.mxu1 %v1684_v0  ;;  %v1688_v3 = vld [vmem:[%s2055_s0] sm:$0xff]   ;;  %v1687_v5 = vld [vmem:[%s2054_s1 + $0x18] sm:$0xff]   ;;  %v1690_v6 = vld [vmem:[%s2055_s0 + $0x8] sm:$0xff]  }
   0x3   :  { %1605 = vmatpush3.bf16.msra.mxu0 %v1684_v0  ;;  %1680 = vmatpush3.bf16.msra.mxu1 %v1684_v0  ;;  %v1689_v4 = vld [vmem:[%s2055_s0 + $0x80] sm:$0xff]   ;;  %v1691_v7 = vld [vmem:[%s2055_s0 + $0x88] sm:$0xff]   ;;  %v1692_v8 = vld [vmem:[%s2055_s0 + $0x10] sm:$0xff]  }
   0x4   :  { %1606 = vmatprep.subr.bf16.mxu0 %v1685_v1  ;;  %1677 = vmatprep.subr.bf16.mxu1 %v1685_v1  ;;  %v1693_v9 = vld [vmem:[%s2055_s0 + $0x90] sm:$0xff]   ;;  %v1694_v10 = vld [vmem:[%s2055_s0 + $0x18] sm:$0xff]   ;;  %v1696_v12 = vld [vmem:[%s2055_s0 + $0x20] sm:$0xff]  }
   0x5   :  { %1612 = vmatprep.mubr.msk.bf16.mxu0 %vm278_vm0, %v1688_v3  ;;  %1644 = vmatprep.mubr.msk.bf16.mxu1 %vm278_vm0, %v1689_v4  ;;  %v1695_v11 = vld [vmem:[%s2055_s0 + $0x98] sm:$0xff]   ;;  %v1697_v13 = vld [vmem:[%s2055_s0 + $0xa0] sm:$0xff]   ;;  %v1698_v14 = vld [vmem:[%s2055_s0 + $0x28] sm:$0xff]  }
   0x6   :  { %v1699_v15 = vld [vmem:[%s2055_s0 + $0xa8] sm:$0xff]   ;;  %v1700_v16 = vld [vmem:[%s2055_s0 + $0x30] sm:$0xff]   ;;  %v1702_v18 = vld [vmem:[%s2055_s0 + $0x38] sm:$0xff]  }
   0x7   :  { %1607 = vmatpush3.bf16.msra.mxu0 %v1685_v1  ;;  %1681 = vmatpush3.bf16.msra.mxu1 %v1685_v1  ;;  %v1701_v17 = vld [vmem:[%s2055_s0 + $0xb0] sm:$0xff]   ;;  %v1703_v19 = vld [vmem:[%s2055_s0 + $0xb8] sm:$0xff]   ;;  %v1704_v20 = vld [vmem:[%s2055_s0 + $0x40] sm:$0xff]  }
   0x8   :  { %1608 = vmatprep.subr.bf16.mxu0 %v1686_v2  ;;  %1678 = vmatprep.subr.bf16.mxu1 %v1686_v2  ;;  %v1705_v21 = vld [vmem:[%s2055_s0 + $0xc0] sm:$0xff]   ;;  %v1706_v22 = vld [vmem:[%s2055_s0 + $0x48] sm:$0xff]   ;;  %v1708_v24 = vld [vmem:[%s2055_s0 + $0x50] sm:$0xff]  }
   0x9   :  { %v1707_v23 = vld [vmem:[%s2055_s0 + $0xc8] sm:$0xff]   ;;  %v1709_v25 = vld [vmem:[%s2055_s0 + $0xd0] sm:$0xff]   ;;  %v1710_v26 = vld [vmem:[%s2055_s0 + $0x58] sm:$0xff]  }
   0xa   :  { %v1711_v27 = vld [vmem:[%s2055_s0 + $0xd8] sm:$0xff]   ;;  %v1712_v28 = vld [vmem:[%s2055_s0 + $0x60] sm:$0xff]   ;;  %v1714_v30 = vld [vmem:[%s2055_s0 + $0x68] sm:$0xff]  }
   0xb   :  { %1609 = vmatpush3.bf16.msra.mxu0 %v1686_v2  ;;  %1682 = vmatpush3.bf16.msra.mxu1 %v1686_v2  ;;  %v1713_v29 = vld [vmem:[%s2055_s0 + $0xe0] sm:$0xff]   ;;  %v1715_v31 = vld [vmem:[%s2055_s0 + $0xe8] sm:$0xff]   ;;  %v1716_v32 = vld [vmem:[%s2055_s0 + $0x70] sm:$0xff]  }
   0xc   :  { %1610 = vmatprep.subr.bf16.mxu0 %v1687_v5  ;;  %1679 = vmatprep.subr.bf16.mxu1 %v1687_v5  ;;  %v1717_v33 = vld [vmem:[%s2055_s0 + $0xf0] sm:$0xff]   ;;  %v1718_v34 = vld [vmem:[%s2055_s0 + $0x78] sm:$0xff]   ;;  %v1883_v36 = vld [vmem:[%s2056_s2] ss:$0 sm:$0xff] }
   0xd   :  { %v1719_v35 = vld [vmem:[%s2055_s0 + $0xf8] sm:$0xff]  }
   0xf   :  { %1611 = vmatpush3.bf16.msra.mxu0 %v1687_v5  ;;  %1683 = vmatpush3.bf16.msra.mxu1 %v1687_v5 }
  0x12   :  { %1613 = vmatmul.mubr.msk.bf16.vlgmr.msra.gmra.mrb[0].mxu0 %vm278_vm0, %v1690_v6  ;;  %1645 = vmatmul.mubr.msk.bf16.vlgmr.msra.gmra.mrb[0].mxu1 %vm278_vm0, %v1691_v7 }
  0x13   :  { %1616 = vmatprep.mubr.msk.bf16.mxu0 %vm278_vm0, %v1692_v8  ;;  %1648 = vmatprep.mubr.msk.bf16.mxu1 %vm278_vm0, %v1693_v9 }
  0x1a   :  { %1617 = vmatmul.mubr.msk.bf16.gmra.mrb[4].mxu0 %vm278_vm0, %v1694_v10  ;;  %1649 = vmatmul.mubr.msk.bf16.gmra.mrb[4].mxu1 %vm278_vm0, %v1695_v11 }
  0x1b   :  { %1620 = vmatprep.mubr.msk.bf16.mxu0 %vm278_vm0, %v1696_v12  ;;  %1652 = vmatprep.mubr.msk.bf16.mxu1 %vm278_vm0, %v1697_v13 }
  0x22   :  { %1621 = vmatmul.mubr.msk.bf16.gmra.mrb[8].mxu0 %vm278_vm0, %v1698_v14  ;;  %1653 = vmatmul.mubr.msk.bf16.gmra.mrb[8].mxu1 %vm278_vm0, %v1699_v15 }
  0x23   :  { %1624 = vmatprep.mubr.msk.bf16.mxu0 %vm278_vm0, %v1700_v16  ;;  %1656 = vmatprep.mubr.msk.bf16.mxu1 %vm278_vm0, %v1701_v17 }
  0x2a   :  { %1625 = vmatmul.mubr.msk.bf16.gmra.mrb[12].mxu0 %vm278_vm0, %v1702_v18  ;;  %1657 = vmatmul.mubr.msk.bf16.gmra.mrb[12].mxu1 %vm278_vm0, %v1703_v19 }
  0x2b   :  { %1628 = vmatprep.mubr.msk.bf16.mxu0 %vm278_vm0, %v1704_v20  ;;  %1660 = vmatprep.mubr.msk.bf16.mxu1 %vm278_vm0, %v1705_v21 }
  0x32   :  { %1629 = vmatmul.mubr.msk.bf16.gmra.mrb[16].mxu0 %vm278_vm0, %v1706_v22  ;;  %1661 = vmatmul.mubr.msk.bf16.gmra.mrb[16].mxu1 %vm278_vm0, %v1707_v23 }
  0x33   :  { %1632 = vmatprep.mubr.msk.bf16.mxu0 %vm278_vm0, %v1708_v24  ;;  %1664 = vmatprep.mubr.msk.bf16.mxu1 %vm278_vm0, %v1709_v25 }
  0x3a   :  { %1633 = vmatmul.mubr.msk.bf16.gmra.mrb[20].mxu0 %vm278_vm0, %v1710_v26  ;;  %1665 = vmatmul.mubr.msk.bf16.gmra.mrb[20].mxu1 %vm278_vm0, %v1711_v27 }
  0x3b   :  { %1636 = vmatprep.mubr.msk.bf16.mxu0 %vm278_vm0, %v1712_v28  ;;  %1668 = vmatprep.mubr.msk.bf16.mxu1 %vm278_vm0, %v1713_v29 }
  0x42   :  { %1637 = vmatmul.mubr.msk.bf16.gmra.mrb[24].mxu0 %vm278_vm0, %v1714_v30  ;;  %1669 = vmatmul.mubr.msk.bf16.gmra.mrb[24].mxu1 %vm278_vm0, %v1715_v31 }
  0x43   :  { %1640 = vmatprep.mubr.msk.bf16.mxu0 %vm278_vm0, %v1716_v32  ;;  %1672 = vmatprep.mubr.msk.bf16.mxu1 %vm278_vm0, %v1717_v33 }
  0x4a   :  { %1641 = vmatmul.mubr.msk.bf16.gmra.mrb[28].mxu0 %vm278_vm0, %v1718_v34  ;;  %1673 = vmatmul.mubr.msk.bf16.gmra.mrb[28].mxu1 %vm278_vm0, %v1719_v35 }
  0xe5   :  { %v1614_v37 = vpop.f32.mrb[0].mxu0  ;;  %v1646_v38 = vpop.f32.mrb[0].mxu1 }
  0xe6   :  { %v418_v39 = vadd.f32 %v1614_v37, %v1883_v36  ;;  %v546_v40 = vadd.f32 %v1646_v38, %v1883_v36  ;;  %v409_v41 = vpop.f32.mrb[1].mxu0  ;;  %v537_v42 = vpop.f32.mrb[1].mxu1 }
  0xe7   :  { %v410_v43 = vadd.f32 %v1883_v36, %v409_v41  ;;  %v538_v44 = vadd.f32 %v1883_v36, %v537_v42  ;;  %v1615_v45 = vpop.f32.mrb[2].mxu0  ;;  %v1647_v46 = vpop.f32.mrb[2].mxu1 }
  0xe8   :  { %vm666_vm1 = vcmp.ge.f32.partialorder %v418_v39, 0.0  ;;  %v730_v47 = vmul.f32 0.2, %v418_v39  ;;  %vm698_vm2 = vcmp.ge.f32.partialorder %v546_v40, 0.0  ;;  %v762_v48 = vmul.f32 0.2, %v546_v40 }
  0xe9   :  { %vm664_vm3 = vcmp.ge.f32.partialorder %v410_v43, 0.0  ;;  %v728_v49 = vmul.f32 0.2, %v410_v43  ;;  %vm696_vm4 = vcmp.ge.f32.partialorder %v538_v44, 0.0  ;;  %v760_v50 = vmul.f32 0.2, %v538_v44 }
  0xea   :  { %v421_v51 = vadd.f32 %v1615_v45, %v1883_v36  ;;  %v549_v52 = vadd.f32 %v1647_v46, %v1883_v36  ;;  %v412_v53 = vpop.f32.mrb[3].mxu0  ;;  %v540_v54 = vpop.f32.mrb[3].mxu1  ;;  %v794_v55 = vsel %vm666_vm1, %v418_v39, %v730_v47  ;;  %v826_v56 = vsel %vm698_vm2, %v546_v40, %v762_v48 }
  0xeb   :  { %v413_v57 = vadd.f32 %v1883_v36, %v412_v53  ;;  %v541_v58 = vadd.f32 %v1883_v36, %v540_v54  ;;  %v792_v63 = vsel %vm664_vm3, %v410_v43, %v728_v49  ;;  %v824_v0 = vsel %vm696_vm4, %v538_v44, %v760_v50 }
  0xec   :  { %vm667_vm5 = vcmp.ge.f32.partialorder %v421_v51, 0.0  ;;  %v731_v59 = vmul.f32 0.2, %v421_v51  ;;  %vm699_vm6 = vcmp.ge.f32.partialorder %v549_v52, 0.0  ;;  %v763_v60 = vmul.f32 0.2, %v549_v52 }
  0xed   :  { %vm665_vm7 = vcmp.ge.f32.partialorder %v413_v57, 0.0  ;;  %v729_v61 = vmul.f32 0.2, %v413_v57  ;;  %vm697_vm8 = vcmp.ge.f32.partialorder %v541_v58, 0.0  ;;  %v761_v62 = vmul.f32 0.2, %v541_v58 }
  0xee   :  { %v795_v1 = vsel %vm667_vm5, %v421_v51, %v731_v59  ;;  %v827_v2 = vsel %vm699_vm6, %v549_v52, %v763_v60  ;;  %v1618_v3 = vpop.f32.mrb[4].mxu0  ;;  %v1650_v4 = vpop.f32.mrb[4].mxu1 }
  0xef   :  { %v1385_v5 = vpack.c.bf16 %v795_v1, %v794_v55  ;;  %v1465_v6 = vpack.c.bf16 %v827_v2, %v826_v56  ;;  %v793_v7 = vsel %vm665_vm7, %v413_v57, %v729_v61  ;;  %v825_v8 = vsel %vm697_vm8, %v541_v58, %v761_v62  ;;  %v425_v9 = vpop.f32.mrb[5].mxu0  ;;  %v553_v10 = vpop.f32.mrb[5].mxu1 }
  0xf0   :  { %v1380_v11 = vpack.c.bf16 %v793_v7, %v792_v63  ;;  %v1460_v12 = vpack.c.bf16 %v825_v8, %v824_v0  ;;  %v434_v13 = vadd.f32 %v1618_v3, %v1883_v36  ;;  %v562_v14 = vadd.f32 %v1650_v4, %v1883_v36  ;;  %v1619_v15 = vpop.f32.mrb[6].mxu0  ;;  %v1651_v16 = vpop.f32.mrb[6].mxu1 }
  0xf1   :  { %1537 = vst [vmem:[%s2057_s3 + $0x8] sm:$0xff] %v1385_v5   ;;  %1553 = vst [vmem:[%s2057_s3 + $0x88] sm:$0xff] %v1465_v6   ;;  %v426_v17 = vadd.f32 %v1883_v36, %v425_v9  ;;  %v554_v18 = vadd.f32 %v1883_v36, %v553_v10  ;;  %v437_v19 = vadd.f32 %v1619_v15, %v1883_v36  ;;  %v428_v21 = vpop.f32.mrb[7].mxu0  ;;  %v556_v22 = vpop.f32.mrb[7].mxu1 }
  0xf2   :  { %v565_v20 = vadd.f32 %v1651_v16, %v1883_v36  ;;  %1381 = vst [vmem:[%s2057_s3] sm:$0xff] %v1380_v11   ;;  %1552 = vst [vmem:[%s2057_s3 + $0x80] sm:$0xff] %v1460_v12   ;;  %vm670_vm9 = vcmp.ge.f32.partialorder %v434_v13, 0.0  ;;  %v734_v23 = vmul.f32 0.2, %v434_v13  ;;  %vm702_vm10 = vcmp.ge.f32.partialorder %v562_v14, 0.0 }
  0xf3   :  { %v766_v24 = vmul.f32 0.2, %v562_v14  ;;  %vm668_vm11 = vcmp.ge.f32.partialorder %v426_v17, 0.0  ;;  %v732_v25 = vmul.f32 0.2, %v426_v17  ;;  %vm700_vm12 = vcmp.ge.f32.partialorder %v554_v18, 0.0 }
  0xf4   :  { %v764_v26 = vmul.f32 0.2, %v554_v18  ;;  %v798_v27 = vsel %vm670_vm9, %v434_v13, %v734_v23  ;;  %vm671_vm13 = vcmp.ge.f32.partialorder %v437_v19, 0.0  ;;  %v735_v29 = vmul.f32 0.2, %v437_v19 }
  0xf5   :  { %v830_v28 = vsel %vm702_vm10, %v562_v14, %v766_v24  ;;  %v796_v30 = vsel %vm668_vm11, %v426_v17, %v732_v25  ;;  %vm703_vm14 = vcmp.ge.f32.partialorder %v565_v20, 0.0  ;;  %v767_v32 = vmul.f32 0.2, %v565_v20  ;;  %v1622_v33 = vpop.f32.mrb[8].mxu0  ;;  %v1654_v34 = vpop.f32.mrb[8].mxu1 }
  0xf6   :  { %v828_v31 = vsel %vm700_vm12, %v554_v18, %v764_v26  ;;  %v799_v35 = vsel %vm671_vm13, %v437_v19, %v735_v29  ;;  %v429_v37 = vadd.f32 %v1883_v36, %v428_v21  ;;  %v557_v38 = vadd.f32 %v1883_v36, %v556_v22  ;;  %v441_v40 = vpop.f32.mrb[9].mxu0  ;;  %v569_v41 = vpop.f32.mrb[9].mxu1 }
  0xf7   :  { %v450_v39 = vadd.f32 %v1622_v33, %v1883_v36  ;;  %v1395_v42 = vpack.c.bf16 %v799_v35, %v798_v27  ;;  %v831_v43 = vsel %vm703_vm14, %v565_v20, %v767_v32  ;;  %v578_v44 = vadd.f32 %v1654_v34, %v1883_v36  ;;  %v1623_v46 = vpop.f32.mrb[10].mxu0  ;;  %v1655_v47 = vpop.f32.mrb[10].mxu1 }
  0xf8   :  { %v442_v45 = vadd.f32 %v1883_v36, %v441_v40  ;;  %v1475_v48 = vpack.c.bf16 %v831_v43, %v830_v28  ;;  %vm669_vm15 = vcmp.ge.f32.partialorder %v429_v37, 0.0  ;;  %v733_v49 = vmul.f32 0.2, %v429_v37  ;;  %v444_v50 = vpop.f32.mrb[11].mxu0  ;;  %v572_v51 = vpop.f32.mrb[11].mxu1 }
  0xf9   :  { %vm701_vm0 = vcmp.ge.f32.partialorder %v557_v38, 0.0  ;;  %1539 = vst [vmem:[%s2057_s3 + $0x18] sm:$0xff] %v1395_v42   ;;  %v765_v52 = vmul.f32 0.2, %v557_v38  ;;  %vm674_vm1 = vcmp.ge.f32.partialorder %v450_v39, 0.0  ;;  %vm706_vm2 = vcmp.ge.f32.partialorder %v578_v44, 0.0 }
  0xfa   :  { %v738_v53 = vmul.f32 0.2, %v450_v39  ;;  %1555 = vst [vmem:[%s2057_s3 + $0x98] sm:$0xff] %v1475_v48   ;;  %v797_v54 = vsel %vm669_vm15, %v429_v37, %v733_v49  ;;  %v770_v55 = vmul.f32 0.2, %v578_v44  ;;  %vm672_vm3 = vcmp.ge.f32.partialorder %v442_v45, 0.0 }
  0xfb   :  { %v736_v56 = vmul.f32 0.2, %v442_v45  ;;  %v1390_v57 = vpack.c.bf16 %v797_v54, %v796_v30  ;;  %v829_v58 = vsel %vm701_vm0, %v557_v38, %v765_v52  ;;  %v570_v60 = vadd.f32 %v1883_v36, %v569_v41 }
  0xfc   :  { %v802_v59 = vsel %vm674_vm1, %v450_v39, %v738_v53  ;;  %v1470_v61 = vpack.c.bf16 %v829_v58, %v828_v31  ;;  %v834_v62 = vsel %vm706_vm2, %v578_v44, %v770_v55  ;;  %v453_v0 = vadd.f32 %v1623_v46, %v1883_v36 }
  0xfd   :  { %v800_v63 = vsel %vm672_vm3, %v442_v45, %v736_v56  ;;  %1538 = vst [vmem:[%s2057_s3 + $0x10] sm:$0xff] %v1390_v57   ;;  %vm704_vm4 = vcmp.ge.f32.partialorder %v570_v60, 0.0  ;;  %v768_v1 = vmul.f32 0.2, %v570_v60  ;;  %v581_v2 = vadd.f32 %v1655_v47, %v1883_v36  ;;  %v1626_v4 = vpop.f32.mrb[12].mxu0  ;;  %v1658_v5 = vpop.f32.mrb[12].mxu1 }
  0xfe   :  { %v445_v3 = vadd.f32 %v1883_v36, %v444_v50  ;;  %1554 = vst [vmem:[%s2057_s3 + $0x90] sm:$0xff] %v1470_v61   ;;  %vm675_vm5 = vcmp.ge.f32.partialorder %v453_v0, 0.0  ;;  %v739_v6 = vmul.f32 0.2, %v453_v0  ;;  %v573_v7 = vadd.f32 %v1883_v36, %v572_v51  ;;  %v457_v9 = vpop.f32.mrb[13].mxu0  ;;  %v585_v10 = vpop.f32.mrb[13].mxu1 }
  0xff   :  { %v466_v8 = vadd.f32 %v1626_v4, %v1883_v36  ;;  %v832_v11 = vsel %vm704_vm4, %v570_v60, %v768_v1  ;;  %vm707_vm6 = vcmp.ge.f32.partialorder %v581_v2, 0.0  ;;  %v771_v12 = vmul.f32 0.2, %v581_v2  ;;  %v1627_v13 = vpop.f32.mrb[14].mxu0  ;;  %v1659_v14 = vpop.f32.mrb[14].mxu1 }
 0x100   :  { %vm673_vm7 = vcmp.ge.f32.partialorder %v445_v3, 0.0  ;;  %v803_v15 = vsel %vm675_vm5, %v453_v0, %v739_v6  ;;  %v737_v16 = vmul.f32 0.2, %v445_v3  ;;  %vm705_vm8 = vcmp.ge.f32.partialorder %v573_v7, 0.0  ;;  %v460_v18 = vpop.f32.mrb[15].mxu0  ;;  %v588_v22 = vpop.f32.mrb[15].mxu1 }
 0x101   :  { %v769_v17 = vmul.f32 0.2, %v573_v7  ;;  %v1405_v19 = vpack.c.bf16 %v803_v15, %v802_v59  ;;  %v835_v20 = vsel %vm707_vm6, %v581_v2, %v771_v12  ;;  %vm678_vm9 = vcmp.ge.f32.partialorder %v466_v8, 0.0 }
 0x102   :  { %v742_v21 = vmul.f32 0.2, %v466_v8  ;;  %v1485_v23 = vpack.c.bf16 %v835_v20, %v834_v62  ;;  %v801_v24 = vsel %vm673_vm7, %v445_v3, %v737_v16  ;;  %v594_v26 = vadd.f32 %v1658_v5, %v1883_v36 }
 0x103   :  { %v833_v25 = vsel %vm705_vm8, %v573_v7, %v769_v17  ;;  %1541 = vst [vmem:[%s2057_s3 + $0x28] sm:$0xff] %v1405_v19   ;;  %v1400_v27 = vpack.c.bf16 %v801_v24, %v800_v63  ;;  %v458_v30 = vadd.f32 %v1883_v36, %v457_v9  ;;  %v586_v32 = vadd.f32 %v1883_v36, %v585_v10 }
 0x104   :  { %v1480_v28 = vpack.c.bf16 %v833_v25, %v832_v11  ;;  %v806_v29 = vsel %vm678_vm9, %v466_v8, %v742_v21  ;;  %1557 = vst [vmem:[%s2057_s3 + $0xa8] sm:$0xff] %v1485_v23   ;;  %vm710_vm10 = vcmp.ge.f32.partialorder %v594_v26, 0.0  ;;  %v774_v31 = vmul.f32 0.2, %v594_v26 }
 0x105   :  { %v469_v33 = vadd.f32 %v1627_v13, %v1883_v36  ;;  %1540 = vst [vmem:[%s2057_s3 + $0x20] sm:$0xff] %v1400_v27   ;;  %vm676_vm11 = vcmp.ge.f32.partialorder %v458_v30, 0.0  ;;  %v740_v34 = vmul.f32 0.2, %v458_v30  ;;  %v597_v35 = vadd.f32 %v1659_v14, %v1883_v36  ;;  %v1630_v38 = vpop.f32.mrb[16].mxu0  ;;  %v1662_v39 = vpop.f32.mrb[16].mxu1 }
 0x106   :  { %1556 = vst [vmem:[%s2057_s3 + $0xa0] sm:$0xff] %v1480_v28   ;;  %v461_v37 = vadd.f32 %v1883_v36, %v460_v18  ;;  %v838_v40 = vsel %vm710_vm10, %v594_v26, %v774_v31  ;;  %vm708_vm12 = vcmp.ge.f32.partialorder %v586_v32, 0.0  ;;  %v772_v41 = vmul.f32 0.2, %v586_v32  ;;  %v473_v42 = vpop.f32.mrb[17].mxu0  ;;  %v601_v43 = vpop.f32.mrb[17].mxu1 }
 0x107   :  { %vm679_vm13 = vcmp.ge.f32.partialorder %v469_v33, 0.0  ;;  %v804_v44 = vsel %vm676_vm11, %v458_v30, %v740_v34  ;;  %v743_v45 = vmul.f32 0.2, %v469_v33  ;;  %vm711_vm14 = vcmp.ge.f32.partialorder %v597_v35, 0.0  ;;  %v1631_v47 = vpop.f32.mrb[18].mxu0  ;;  %v1663_v51 = vpop.f32.mrb[18].mxu1 }
 0x108   :  { %v775_v46 = vmul.f32 0.2, %v597_v35  ;;  %v836_v48 = vsel %vm708_vm12, %v586_v32, %v772_v41  ;;  %vm677_vm15 = vcmp.ge.f32.partialorder %v461_v37, 0.0  ;;  %v741_v49 = vmul.f32 0.2, %v461_v37  ;;  %v476_v52 = vpop.f32.mrb[19].mxu0 }
 0x109   :  { %v589_v50 = vadd.f32 %v1883_v36, %v588_v22  ;;  %v807_v53 = vsel %vm679_vm13, %v469_v33, %v743_v45  ;;  %v482_v55 = vadd.f32 %v1630_v38, %v1883_v36  ;;  %v610_v56 = vadd.f32 %v1662_v39, %v1883_v36  ;;  %v604_v57 = vpop.f32.mrb[19].mxu1 }
 0x10a   :  { %v839_v54 = vsel %vm711_vm14, %v597_v35, %v775_v46  ;;  %v1415_v58 = vpack.c.bf16 %v807_v53, %v806_v29  ;;  %v805_v60 = vsel %vm677_vm15, %v461_v37, %v741_v49  ;;  %v474_v1 = vadd.f32 %v1883_v36, %v473_v42 }
 0x10b   :  { %v1495_v59 = vpack.c.bf16 %v839_v54, %v838_v40  ;;  %vm709_vm0 = vcmp.ge.f32.partialorder %v589_v50, 0.0  ;;  %v1410_v61 = vpack.c.bf16 %v805_v60, %v804_v44  ;;  %v773_v62 = vmul.f32 0.2, %v589_v50 }
 0x10c   :  { %vm682_vm1 = vcmp.ge.f32.partialorder %v482_v55, 0.0  ;;  %v746_v63 = vmul.f32 0.2, %v482_v55  ;;  %1543 = vst [vmem:[%s2057_s3 + $0x38] sm:$0xff] %v1415_v58   ;;  %vm714_vm2 = vcmp.ge.f32.partialorder %v610_v56, 0.0  ;;  %v602_v2 = vadd.f32 %v1883_v36, %v601_v43 }
 0x10d   :  { %1559 = vst [vmem:[%s2057_s3 + $0xb8] sm:$0xff] %v1495_v59   ;;  %v778_v0 = vmul.f32 0.2, %v610_v56  ;;  %1542 = vst [vmem:[%s2057_s3 + $0x30] sm:$0xff] %v1410_v61   ;;  %v837_v3 = vsel %vm709_vm0, %v589_v50, %v773_v62  ;;  %v485_v5 = vadd.f32 %v1631_v47, %v1883_v36  ;;  %v613_v6 = vadd.f32 %v1663_v51, %v1883_v36  ;;  %v1634_v7 = vpop.f32.mrb[20].mxu0  ;;  %v1666_v8 = vpop.f32.mrb[20].mxu1 }
 0x10e   :  { %v810_v4 = vsel %vm682_vm1, %v482_v55, %v746_v63  ;;  %v1490_v9 = vpack.c.bf16 %v837_v3, %v836_v48  ;;  %vm680_vm3 = vcmp.ge.f32.partialorder %v474_v1, 0.0  ;;  %v744_v11 = vmul.f32 0.2, %v474_v1  ;;  %v489_v12 = vpop.f32.mrb[21].mxu0  ;;  %v617_v13 = vpop.f32.mrb[21].mxu1 }
 0x10f   :  { %v842_v10 = vsel %vm714_vm2, %v610_v56, %v778_v0  ;;  %vm712_vm4 = vcmp.ge.f32.partialorder %v602_v2, 0.0  ;;  %v776_v14 = vmul.f32 0.2, %v602_v2  ;;  %vm683_vm5 = vcmp.ge.f32.partialorder %v485_v5, 0.0  ;;  %v1635_v19 = vpop.f32.mrb[22].mxu0  ;;  %v1667_v20 = vpop.f32.mrb[22].mxu1 }
 0x110   :  { %v747_v15 = vmul.f32 0.2, %v485_v5  ;;  %1558 = vst [vmem:[%s2057_s3 + $0xb0] sm:$0xff] %v1490_v9   ;;  %v808_v16 = vsel %vm680_vm3, %v474_v1, %v744_v11  ;;  %vm715_vm6 = vcmp.ge.f32.partialorder %v613_v6, 0.0  ;;  %v779_v17 = vmul.f32 0.2, %v613_v6 }
 0x111   :  { %v477_v18 = vadd.f32 %v1883_v36, %v476_v52  ;;  %v840_v21 = vsel %vm712_vm4, %v602_v2, %v776_v14  ;;  %v605_v23 = vadd.f32 %v1883_v36, %v604_v57  ;;  %v498_v24 = vadd.f32 %v1634_v7, %v1883_v36  ;;  %v492_v25 = vpop.f32.mrb[23].mxu0  ;;  %v620_v26 = vpop.f32.mrb[23].mxu1 }
 0x112   :  { %v811_v22 = vsel %vm683_vm5, %v485_v5, %v747_v15  ;;  %v843_v28 = vsel %vm715_vm6, %v613_v6, %v779_v17  ;;  %v626_v34 = vadd.f32 %v1666_v8, %v1883_v36  ;;  %v490_v35 = vadd.f32 %v1883_v36, %v489_v12 }
 0x113   :  { %v1425_v27 = vpack.c.bf16 %v811_v22, %v810_v4  ;;  %vm681_vm7 = vcmp.ge.f32.partialorder %v477_v18, 0.0  ;;  %v745_v29 = vmul.f32 0.2, %v477_v18  ;;  %v1505_v30 = vpack.c.bf16 %v843_v28, %v842_v10 }
 0x114   :  { %vm713_vm8 = vcmp.ge.f32.partialorder %v605_v23, 0.0  ;;  %v777_v31 = vmul.f32 0.2, %v605_v23  ;;  %vm686_vm9 = vcmp.ge.f32.partialorder %v498_v24, 0.0  ;;  %v750_v33 = vmul.f32 0.2, %v498_v24 }
 0x115   :  { %1545 = vst [vmem:[%s2057_s3 + $0x48] sm:$0xff] %v1425_v27   ;;  %v809_v32 = vsel %vm681_vm7, %v477_v18, %v745_v29  ;;  %1561 = vst [vmem:[%s2057_s3 + $0xc8] sm:$0xff] %v1505_v30   ;;  %v618_v39 = vadd.f32 %v1883_v36, %v617_v13  ;;  %v501_v40 = vadd.f32 %v1635_v19, %v1883_v36  ;;  %v1638_v41 = vpop.f32.mrb[24].mxu0  ;;  %v1670_v42 = vpop.f32.mrb[24].mxu1  ;;  %vm718_vm10 = vcmp.ge.f32.partialorder %v626_v34, 0.0 }
 0x116   :  { %v1420_v37 = vpack.c.bf16 %v809_v32, %v808_v16  ;;  %v841_v38 = vsel %vm713_vm8, %v605_v23, %v777_v31  ;;  %v782_v44 = vmul.f32 0.2, %v626_v34  ;;  %v505_v45 = vpop.f32.mrb[25].mxu0  ;;  %v633_v46 = vpop.f32.mrb[25].mxu1  ;;  %v814_v47 = vsel %vm686_vm9, %v498_v24, %v750_v33 }
 0x117   :  { %v1500_v43 = vpack.c.bf16 %v841_v38, %v840_v21  ;;  %vm684_vm11 = vcmp.ge.f32.partialorder %v490_v35, 0.0  ;;  %v748_v48 = vmul.f32 0.2, %v490_v35  ;;  %v780_v49 = vmul.f32 0.2, %v618_v39  ;;  %v1639_v52 = vpop.f32.mrb[26].mxu0 }
 0x118   :  { %1544 = vst [vmem:[%s2057_s3 + $0x40] sm:$0xff] %v1420_v37   ;;  %vm716_vm12 = vcmp.ge.f32.partialorder %v618_v39, 0.0  ;;  %vm687_vm13 = vcmp.ge.f32.partialorder %v501_v40, 0.0  ;;  %v751_v50 = vmul.f32 0.2, %v501_v40  ;;  %v629_v51 = vadd.f32 %v1667_v20, %v1883_v36  ;;  %v1671_v53 = vpop.f32.mrb[26].mxu1 }
 0x119   :  { %1560 = vst [vmem:[%s2057_s3 + $0xc0] sm:$0xff] %v1500_v43   ;;  %v846_v54 = vsel %vm718_vm10, %v626_v34, %v782_v44  ;;  %v812_v55 = vsel %vm684_vm11, %v490_v35, %v748_v48  ;;  %v493_v56 = vadd.f32 %v1883_v36, %v492_v25  ;;  %v621_v57 = vadd.f32 %v1883_v36, %v620_v26  ;;  %v508_v58 = vpop.f32.mrb[27].mxu0  ;;  %v636_v59 = vpop.f32.mrb[27].mxu1 }
 0x11a   :  { %v815_v60 = vsel %vm687_vm13, %v501_v40, %v751_v50  ;;  %vm719_vm14 = vcmp.ge.f32.partialorder %v629_v51, 0.0  ;;  %v783_v61 = vmul.f32 0.2, %v629_v51  ;;  %v514_v62 = vadd.f32 %v1638_v41, %v1883_v36 }
 0x11b   :  { %v1435_v63 = vpack.c.bf16 %v815_v60, %v814_v47  ;;  %vm685_vm15 = vcmp.ge.f32.partialorder %v493_v56, 0.0  ;;  %v749_v0 = vmul.f32 0.2, %v493_v56  ;;  %vm717_vm0 = vcmp.ge.f32.partialorder %v621_v57, 0.0 }
 0x11c   :  { %v847_v1 = vsel %vm719_vm14, %v629_v51, %v783_v61  ;;  %v781_v2 = vmul.f32 0.2, %v621_v57  ;;  %vm690_vm1 = vcmp.ge.f32.partialorder %v514_v62, 0.0  ;;  %v754_v3 = vmul.f32 0.2, %v514_v62 }
 0x11d   :  { %1547 = vst [vmem:[%s2057_s3 + $0x58] sm:$0xff] %v1435_v63   ;;  %v1515_v4 = vpack.c.bf16 %v847_v1, %v846_v54  ;;  %v813_v5 = vsel %vm685_vm15, %v493_v56, %v749_v0  ;;  %v642_v6 = vadd.f32 %v1670_v42, %v1883_v36  ;;  %v506_v7 = vadd.f32 %v1883_v36, %v505_v45  ;;  %v1642_v8 = vpop.f32.mrb[28].mxu0  ;;  %v1674_v9 = vpop.f32.mrb[28].mxu1 }
 0x11e   :  { %v844_v10 = vsel %vm716_vm12, %v618_v39, %v780_v49  ;;  %v1430_v11 = vpack.c.bf16 %v813_v5, %v812_v55  ;;  %v845_v12 = vsel %vm717_vm0, %v621_v57, %v781_v2  ;;  %v634_v13 = vadd.f32 %v1883_v36, %v633_v46  ;;  %v521_v14 = vpop.f32.mrb[29].mxu0  ;;  %v649_v15 = vpop.f32.mrb[29].mxu1 }
 0x11f   :  { %1563 = vst [vmem:[%s2057_s3 + $0xd8] sm:$0xff] %v1515_v4   ;;  %v1510_v16 = vpack.c.bf16 %v845_v12, %v844_v10  ;;  %vm722_vm2 = vcmp.ge.f32.partialorder %v642_v6, 0.0  ;;  %v786_v17 = vmul.f32 0.2, %v642_v6  ;;  %vm688_vm3 = vcmp.ge.f32.partialorder %v506_v7, 0.0  ;;  %v1643_v18 = vpop.f32.mrb[30].mxu0 }
 0x120   :  { %v1675_v19 = vpop.f32.mrb[30].mxu1  ;;  %1546 = vst [vmem:[%s2057_s3 + $0x50] sm:$0xff] %v1430_v11   ;;  %v818_v20 = vsel %vm690_vm1, %v514_v62, %v754_v3  ;;  %v752_v21 = vmul.f32 0.2, %v506_v7  ;;  %vm720_vm4 = vcmp.ge.f32.partialorder %v634_v13, 0.0  ;;  %v517_v22 = vadd.f32 %v1639_v52, %v1883_v36  ;;  %v524_v23 = vpop.f32.mrb[31].mxu0 }
 0x121   :  { %1562 = vst [vmem:[%s2057_s3 + $0xd0] sm:$0xff] %v1510_v16   ;;  %v784_v24 = vmul.f32 0.2, %v634_v13  ;;  %v645_v25 = vadd.f32 %v1671_v53, %v1883_v36  ;;  %v509_v26 = vadd.f32 %v1883_v36, %v508_v58  ;;  %v637_v27 = vadd.f32 %v1883_v36, %v636_v59  ;;  %v652_v28 = vpop.f32.mrb[31].mxu1 }
 0x122   :  { %v850_v29 = vsel %vm722_vm2, %v642_v6, %v786_v17  ;;  %v816_v30 = vsel %vm688_vm3, %v506_v7, %v752_v21  ;;  %vm691_vm5 = vcmp.ge.f32.partialorder %v517_v22, 0.0  ;;  %v755_v31 = vmul.f32 0.2, %v517_v22 }
 0x123   :  { %vm723_vm6 = vcmp.ge.f32.partialorder %v645_v25, 0.0  ;;  %v787_v32 = vmul.f32 0.2, %v645_v25  ;;  %vm689_vm7 = vcmp.ge.f32.partialorder %v509_v26, 0.0  ;;  %v753_v33 = vmul.f32 0.2, %v509_v26 }
 0x124   :  { %v819_v34 = vsel %vm691_vm5, %v517_v22, %v755_v31  ;;  %vm721_vm8 = vcmp.ge.f32.partialorder %v637_v27, 0.0  ;;  %v785_v35 = vmul.f32 0.2, %v637_v27  ;;  %v530_v37 = vadd.f32 %v1642_v8, %v1883_v36 }
 0x125   :  { %v1445_v38 = vpack.c.bf16 %v819_v34, %v818_v20  ;;  %v851_v39 = vsel %vm723_vm6, %v645_v25, %v787_v32  ;;  %v817_v40 = vsel %vm689_vm7, %v509_v26, %v753_v33  ;;  %v658_v41 = vadd.f32 %v1674_v9, %v1883_v36 }
 0x126   :  { %v848_v42 = vsel %vm720_vm4, %v634_v13, %v784_v24  ;;  %v1525_v43 = vpack.c.bf16 %v851_v39, %v850_v29  ;;  %v1440_v44 = vpack.c.bf16 %v817_v40, %v816_v30  ;;  %v849_v45 = vsel %vm721_vm8, %v637_v27, %v785_v35 }
 0x127   :  { %1549 = vst [vmem:[%s2057_s3 + $0x68] sm:$0xff] %v1445_v38   ;;  %v1520_v46 = vpack.c.bf16 %v849_v45, %v848_v42  ;;  %vm694_vm9 = vcmp.ge.f32.partialorder %v530_v37, 0.0  ;;  %v758_v47 = vmul.f32 0.2, %v530_v37  ;;  %v790_v48 = vmul.f32 0.2, %v658_v41 }
 0x128   :  { %1565 = vst [vmem:[%s2057_s3 + $0xe8] sm:$0xff] %v1525_v43   ;;  %1548 = vst [vmem:[%s2057_s3 + $0x60] sm:$0xff] %v1440_v44   ;;  %v522_v49 = vadd.f32 %v1883_v36, %v521_v14  ;;  %v650_v50 = vadd.f32 %v1883_v36, %v649_v15  ;;  %v533_v51 = vadd.f32 %v1643_v18, %v1883_v36  ;;  %vm726_vm10 = vcmp.ge.f32.partialorder %v658_v41, 0.0 }
 0x129   :  { %v661_v52 = vadd.f32 %v1675_v19, %v1883_v36  ;;  %1564 = vst [vmem:[%s2057_s3 + $0xe0] sm:$0xff] %v1520_v46   ;;  %v525_v53 = vadd.f32 %v1883_v36, %v524_v23  ;;  %v653_v54 = vadd.f32 %v1883_v36, %v652_v28  ;;  %v822_v55 = vsel %vm694_vm9, %v530_v37, %v758_v47 }
 0x12a   :  { %vm692_vm11 = vcmp.ge.f32.partialorder %v522_v49, 0.0  ;;  %v756_v56 = vmul.f32 0.2, %v522_v49  ;;  %v788_v57 = vmul.f32 0.2, %v650_v50  ;;  %vm695_vm12 = vcmp.ge.f32.partialorder %v533_v51, 0.0 }
 0x12b   :  { %v759_v58 = vmul.f32 0.2, %v533_v51  ;;  %vm727_vm13 = vcmp.ge.f32.partialorder %v661_v52, 0.0  ;;  %v791_v59 = vmul.f32 0.2, %v661_v52  ;;  %v854_v60 = vsel %vm726_vm10, %v658_v41, %v790_v48 }
 0x12c   :  { %vm724_vm14 = vcmp.ge.f32.partialorder %v650_v50, 0.0  ;;  %vm693_vm15 = vcmp.ge.f32.partialorder %v525_v53, 0.0  ;;  %v757_v61 = vmul.f32 0.2, %v525_v53  ;;  %vm725_vm0 = vcmp.ge.f32.partialorder %v653_v54, 0.0 }
 0x12d   :  { %v823_v62 = vsel %vm695_vm12, %v533_v51, %v759_v58  ;;  %v855_v63 = vsel %vm727_vm13, %v661_v52, %v791_v59  ;;  %v789_v0 = vmul.f32 0.2, %v653_v54  ;;  %v820_v1 = vsel %vm692_vm11, %v522_v49, %v756_v56 }
 0x12e   :  { %v1455_v2 = vpack.c.bf16 %v823_v62, %v822_v55  ;;  %v1535_v3 = vpack.c.bf16 %v855_v63, %v854_v60  ;;  %v821_v36 = vsel %vm693_vm15, %v525_v53, %v757_v61  ;;  %v852_v4 = vsel %vm724_vm14, %v650_v50, %v788_v57 }
 0x12f   :  { %v1450_v5 = vpack.c.bf16 %v821_v36, %v820_v1  ;;  %v853_v6 = vsel %vm725_vm0, %v653_v54, %v789_v0 }
 0x130   :  { %1551 = vst [vmem:[%s2057_s3 + $0x78] sm:$0xff] %v1455_v2   ;;  %1567 = vst [vmem:[%s2057_s3 + $0xf8] sm:$0xff] %v1535_v3   ;;  %v1530_v7 = vpack.c.bf16 %v853_v6, %v852_v4 }
 0x131   :  { %1550 = vst [vmem:[%s2057_s3 + $0x70] sm:$0xff] %v1450_v5  }
 0x132   :  { %1566 = vst [vmem:[%s2057_s3 + $0xf0] sm:$0xff] %v1530_v7  }

// kernel: mul.1
= control target key start
LH: loop header
LB: loop body
LE: loop exit
PB: predicated region body
PF: predicated region fallthrough
CT: control target
= control target key end

     0   :  { %s34_s0 = inlined_call_operand.vmem [shape: f32[1,128], index: 0, kind: input, shape index: {}]   ;;  %s35_s1 = inlined_call_operand.vmem [shape: f32[1,128], index: 1, kind: input, shape index: {}]   ;;  %s36_s2 = inlined_call_operand.vmem [shape: f32[1,128], index: 2, kind: output, shape index: {}]  }
   0x1   :  { %v3_v0 = vld [vmem:[%s34_s0] sm:$0x1] }
   0x2   :  { %v4_v1 = vld [vmem:[%s35_s1] sm:$0x1] }
   0x3   :  { %v7_v2 = vmul.f32 %v4_v1, %v3_v0 }
   0x5   :  { %9 = vst [vmem:[%s36_s2] sm:$0x1] %v7_v2 }

// kernel: nlayer_discriminator_forward.10
= control target key start
LH: loop header
LB: loop body
LE: loop exit
PB: predicated region body
PF: predicated region fallthrough
CT: control target
= control target key end

     0   :  { %s455_s0 = inlined_call_operand.vmem [shape: bf16[128,128], index: 0, kind: input, shape index: {}]   ;;  %s456_s1 = inlined_call_operand.vmem [shape: f32[1,128], index: 1, kind: input, shape index: {}]   ;;  %s457_s2 = inlined_call_operand.vmem [shape: f32[1,128], index: 2, kind: input, shape index: {}]   ;;  %s458_s3 = inlined_call_operand.vmem [shape: bf16[128,128], index: 3, kind: output, shape index: {}]  }
   0x1   :  { %v259_v0 = vld [vmem:[%s455_s0] sm:$0xff]   ;;  %v330_v4 = vld [vmem:[%s455_s0 + $0x8] sm:$0xff]   ;;  %v331_v5 = vld [vmem:[%s455_s0 + $0x10] sm:$0xff]  }
   0x2   :  { %v370_v1 = vld [vmem:[%s456_s1] ss:$0 sm:$0xff]  ;;  %v260_v2 = vunpack.c.l.bf16 %v259_v0  ;;  %v261_v3 = vunpack.c.h.bf16 %v259_v0  ;;  %v332_v6 = vld [vmem:[%s455_s0 + $0x18] sm:$0xff]   ;;  %v264_v8 = vunpack.c.l.bf16 %v330_v4  ;;  %v265_v9 = vunpack.c.h.bf16 %v330_v4  ;;  %v334_v35 = vld [vmem:[%s455_s0 + $0x28] sm:$0xff]  }
   0x3   :  { %v384_v7 = vld [vmem:[%s457_s2] ss:$0 sm:$0xff]  ;;  %v268_v10 = vunpack.c.l.bf16 %v331_v5  ;;  %v269_v11 = vunpack.c.h.bf16 %v331_v5  ;;  %v272_v14 = vunpack.c.l.bf16 %v332_v6  ;;  %v273_v15 = vunpack.c.h.bf16 %v332_v6  ;;  %v335_v48 = vld [vmem:[%s455_s0 + $0x30] sm:$0xff]   ;;  %v336_v4 = vld [vmem:[%s455_s0 + $0x38] sm:$0xff]  }
   0x4   :  { %v53_v12 = vmul.f32 %v260_v2, %v370_v1  ;;  %v54_v13 = vmul.f32 %v261_v3, %v370_v1  ;;  %v55_v16 = vmul.f32 %v264_v8, %v370_v1  ;;  %v56_v17 = vmul.f32 %v265_v9, %v370_v1  ;;  %v333_v34 = vld [vmem:[%s455_s0 + $0x20] sm:$0xff]  }
   0x5   :  { %v57_v18 = vmul.f32 %v268_v10, %v370_v1  ;;  %v58_v19 = vmul.f32 %v269_v11, %v370_v1  ;;  %v59_v22 = vmul.f32 %v272_v14, %v370_v1  ;;  %v60_v23 = vmul.f32 %v273_v15, %v370_v1 }
   0x6   :  { %v76_v20 = vadd.f32 %v384_v7, %v53_v12  ;;  %v77_v21 = vadd.f32 %v384_v7, %v54_v13  ;;  %v78_v24 = vadd.f32 %v384_v7, %v55_v16  ;;  %v79_v25 = vadd.f32 %v384_v7, %v56_v17 }
   0x7   :  { %v80_v26 = vadd.f32 %v384_v7, %v57_v18  ;;  %v81_v27 = vadd.f32 %v384_v7, %v58_v19  ;;  %v82_v42 = vadd.f32 %v384_v7, %v59_v22  ;;  %v83_v43 = vadd.f32 %v384_v7, %v60_v23 }
   0x8   :  { %vm92_vm0 = vcmp.ge.f32.partialorder %v76_v20, 0.0  ;;  %vm93_vm1 = vcmp.ge.f32.partialorder %v77_v21, 0.0  ;;  %v108_v28 = vmul.f32 0.2, %v76_v20  ;;  %v109_v29 = vmul.f32 0.2, %v77_v21 }
   0x9   :  { %vm94_vm2 = vcmp.ge.f32.partialorder %v78_v24, 0.0  ;;  %vm95_vm3 = vcmp.ge.f32.partialorder %v79_v25, 0.0  ;;  %v110_v30 = vmul.f32 0.2, %v78_v24  ;;  %v111_v31 = vmul.f32 0.2, %v79_v25 }
   0xa   :  { %v124_v32 = vsel %vm92_vm0, %v76_v20, %v108_v28  ;;  %v125_v33 = vsel %vm93_vm1, %v77_v21, %v109_v29  ;;  %vm96_vm4 = vcmp.ge.f32.partialorder %v80_v26, 0.0  ;;  %vm97_vm5 = vcmp.ge.f32.partialorder %v81_v27, 0.0 }
   0xb   :  { %v293_v36 = vpack.c.bf16 %v125_v33, %v124_v32  ;;  %v126_v37 = vsel %vm94_vm2, %v78_v24, %v110_v30  ;;  %v127_v38 = vsel %vm95_vm3, %v79_v25, %v111_v31  ;;  %v112_v39 = vmul.f32 0.2, %v80_v26 }
   0xc   :  { %v298_v40 = vpack.c.bf16 %v127_v38, %v126_v37  ;;  %v113_v41 = vmul.f32 0.2, %v81_v27  ;;  %v276_v45 = vunpack.c.l.bf16 %v333_v34  ;;  %v277_v46 = vunpack.c.h.bf16 %v333_v34 }
   0xd   :  { %294 = vst [vmem:[%s458_s3] sm:$0xff] %v293_v36   ;;  %v128_v44 = vsel %vm96_vm4, %v80_v26, %v112_v39  ;;  %v280_v47 = vunpack.c.l.bf16 %v334_v35  ;;  %vm98_vm6 = vcmp.ge.f32.partialorder %v82_v42, 0.0  ;;  %vm99_vm7 = vcmp.ge.f32.partialorder %v83_v43, 0.0 }
   0xe   :  { %337 = vst [vmem:[%s458_s3 + $0x8] sm:$0xff] %v298_v40   ;;  %v129_v49 = vsel %vm97_vm5, %v81_v27, %v113_v41  ;;  %v114_v50 = vmul.f32 0.2, %v82_v42  ;;  %v115_v52 = vmul.f32 0.2, %v83_v43  ;;  %v61_v53 = vmul.f32 %v276_v45, %v370_v1 }
   0xf   :  { %v303_v51 = vpack.c.bf16 %v129_v49, %v128_v44  ;;  %v62_v54 = vmul.f32 %v277_v46, %v370_v1  ;;  %v281_v56 = vunpack.c.h.bf16 %v334_v35  ;;  %v63_v57 = vmul.f32 %v280_v47, %v370_v1 }
  0x10   :  { %v130_v55 = vsel %vm98_vm6, %v82_v42, %v114_v50  ;;  %v284_v58 = vunpack.c.l.bf16 %v335_v48  ;;  %v131_v59 = vsel %vm99_vm7, %v83_v43, %v115_v52  ;;  %v84_v60 = vadd.f32 %v384_v7, %v61_v53 }
  0x11   :  { %338 = vst [vmem:[%s458_s3 + $0x10] sm:$0xff] %v303_v51   ;;  %v85_v61 = vadd.f32 %v384_v7, %v62_v54  ;;  %v285_v62 = vunpack.c.h.bf16 %v335_v48  ;;  %v308_v63 = vpack.c.bf16 %v131_v59, %v130_v55  ;;  %v64_v0 = vmul.f32 %v281_v56, %v370_v1 }
  0x12   :  { %v86_v2 = vadd.f32 %v384_v7, %v63_v57  ;;  %v65_v3 = vmul.f32 %v284_v58, %v370_v1  ;;  %vm100_vm8 = vcmp.ge.f32.partialorder %v84_v60, 0.0  ;;  %v116_v5 = vmul.f32 0.2, %v84_v60 }
  0x13   :  { %vm101_vm9 = vcmp.ge.f32.partialorder %v85_v61, 0.0  ;;  %v117_v6 = vmul.f32 0.2, %v85_v61  ;;  %339 = vst [vmem:[%s458_s3 + $0x18] sm:$0xff] %v308_v63   ;;  %v87_v8 = vadd.f32 %v384_v7, %v64_v0  ;;  %v66_v10 = vmul.f32 %v285_v62, %v370_v1 }
  0x14   :  { %vm102_vm10 = vcmp.ge.f32.partialorder %v86_v2, 0.0  ;;  %v118_v9 = vmul.f32 0.2, %v86_v2  ;;  %v132_v11 = vsel %vm100_vm8, %v84_v60, %v116_v5  ;;  %v88_v13 = vadd.f32 %v384_v7, %v65_v3 }
  0x15   :  { %v133_v12 = vsel %vm101_vm9, %v85_v61, %v117_v6  ;;  %v288_v14 = vunpack.c.l.bf16 %v336_v4  ;;  %vm103_vm11 = vcmp.ge.f32.partialorder %v87_v8, 0.0  ;;  %v119_v16 = vmul.f32 0.2, %v87_v8 }
  0x16   :  { %v313_v15 = vpack.c.bf16 %v133_v12, %v132_v11  ;;  %v134_v17 = vsel %vm102_vm10, %v86_v2, %v118_v9  ;;  %v89_v18 = vadd.f32 %v384_v7, %v66_v10  ;;  %vm104_vm12 = vcmp.ge.f32.partialorder %v88_v13, 0.0 }
  0x17   :  { %v120_v19 = vmul.f32 0.2, %v88_v13  ;;  %v289_v20 = vunpack.c.h.bf16 %v336_v4  ;;  %v135_v21 = vsel %vm103_vm11, %v87_v8, %v119_v16  ;;  %v67_v22 = vmul.f32 %v288_v14, %v370_v1 }
  0x18   :  { %340 = vst [vmem:[%s458_s3 + $0x20] sm:$0xff] %v313_v15   ;;  %v318_v23 = vpack.c.bf16 %v135_v21, %v134_v17  ;;  %vm105_vm13 = vcmp.ge.f32.partialorder %v89_v18, 0.0  ;;  %v121_v24 = vmul.f32 0.2, %v89_v18 }
  0x19   :  { %v136_v25 = vsel %vm104_vm12, %v88_v13, %v120_v19  ;;  %v68_v26 = vmul.f32 %v289_v20, %v370_v1  ;;  %v90_v27 = vadd.f32 %v384_v7, %v67_v22 }
  0x1a   :  { %341 = vst [vmem:[%s458_s3 + $0x28] sm:$0xff] %v318_v23   ;;  %v137_v28 = vsel %vm105_vm13, %v89_v18, %v121_v24 }
  0x1b   :  { %v323_v29 = vpack.c.bf16 %v137_v28, %v136_v25  ;;  %v91_v30 = vadd.f32 %v384_v7, %v68_v26  ;;  %vm106_vm14 = vcmp.ge.f32.partialorder %v90_v27, 0.0  ;;  %v122_v31 = vmul.f32 0.2, %v90_v27 }
  0x1d   :  { %342 = vst [vmem:[%s458_s3 + $0x30] sm:$0xff] %v323_v29   ;;  %vm107_vm15 = vcmp.ge.f32.partialorder %v91_v30, 0.0  ;;  %v123_v32 = vmul.f32 0.2, %v91_v30  ;;  %v138_v33 = vsel %vm106_vm14, %v90_v27, %v122_v31 }
  0x1f   :  { %v139_v1 = vsel %vm107_vm15, %v91_v30, %v123_v32 }
  0x20   :  { %v328_v34 = vpack.c.bf16 %v139_v1, %v138_v33 }
  0x22   :  { %343 = vst [vmem:[%s458_s3 + $0x38] sm:$0xff] %v328_v34  }

// kernel: nlayer_discriminator_forward.9
= control target key start
LH: loop header
LB: loop body
LE: loop exit
PB: predicated region body
PF: predicated region fallthrough
CT: control target
= control target key end

     0   :  { %vm396_vm0 = vcmask 1040384   ;;  %s757_s1 = inlined_call_operand.vmem [shape: bf16[128,128], index: 1, kind: input, shape index: {}]   ;;  %s758_s0 = inlined_call_operand.vmem [shape: bf16[128,128], index: 0, kind: input, shape index: {}]   ;;  %s759_s2 = inlined_call_operand.vmem [shape: bf16[128,128], index: 2, kind: output, shape index: {0}]   ;;  %s760_s3 = inlined_call_operand.vmem [shape: f32[1,2,128], index: 3, kind: output, shape index: {1}]  }
   0x1   :  { %v646_v0 = vld [vmem:[%s757_s1] sm:$0xff]   ;;  %v647_v1 = vld [vmem:[%s757_s1 + $0x8] sm:$0xff]   ;;  %v648_v2 = vld [vmem:[%s757_s1 + $0x10] sm:$0xff]  }
   0x2   :  { %598 = vmatprep.subr.bf16.mxu0 %v646_v0  ;;  %630 = vmatprep.subr.bf16.mxu1 %v646_v0  ;;  %v649_v3 = vld [vmem:[%s757_s1 + $0x18] sm:$0xff]   ;;  %v654_v4 = vld [vmem:[%s758_s0] sm:$0xff]   ;;  %v651_v7 = vld [vmem:[%s757_s1 + $0x28] sm:$0xff]  }
   0x3   :  { %599 = vmatpush3.bf16.msra.mxu0 %v646_v0  ;;  %638 = vmatpush3.bf16.msra.mxu1 %v646_v0  ;;  %v650_v5 = vld [vmem:[%s757_s1 + $0x20] sm:$0xff]   ;;  %v652_v8 = vld [vmem:[%s757_s1 + $0x30] sm:$0xff]   ;;  %v653_v9 = vld [vmem:[%s757_s1 + $0x38] sm:$0xff]  }
   0x4   :  { %600 = vmatprep.subr.bf16.mxu0 %v647_v1  ;;  %631 = vmatprep.subr.bf16.mxu1 %v647_v1  ;;  %v658_v6 = vld [vmem:[%s758_s0 + $0x20] sm:$0xff]   ;;  %v655_v10 = vld [vmem:[%s758_s0 + $0x8] sm:$0xff]   ;;  %v656_v12 = vld [vmem:[%s758_s0 + $0x10] sm:$0xff]  }
   0x5   :  { %614 = vmatprep.mubr.bf16.mxu0 %v654_v4  ;;  %622 = vmatprep.mubr.bf16.mxu1 %v658_v6  ;;  %v659_v11 = vld [vmem:[%s758_s0 + $0x28] sm:$0xff]   ;;  %v660_v13 = vld [vmem:[%s758_s0 + $0x30] sm:$0xff]   ;;  %v657_v14 = vld [vmem:[%s758_s0 + $0x18] sm:$0xff]  }
   0x6   :  { %v661_v15 = vld [vmem:[%s758_s0 + $0x38] sm:$0xff]  }
   0x7   :  { %601 = vmatpush3.bf16.msra.mxu0 %v647_v1  ;;  %639 = vmatpush3.bf16.msra.mxu1 %v647_v1 }
   0x8   :  { %602 = vmatprep.subr.bf16.mxu0 %v648_v2  ;;  %632 = vmatprep.subr.bf16.mxu1 %v648_v2 }
   0xb   :  { %603 = vmatpush3.bf16.msra.mxu0 %v648_v2  ;;  %640 = vmatpush3.bf16.msra.mxu1 %v648_v2 }
   0xc   :  { %604 = vmatprep.subr.bf16.mxu0 %v649_v3  ;;  %633 = vmatprep.subr.bf16.mxu1 %v649_v3 }
   0xf   :  { %605 = vmatpush3.bf16.msra.mxu0 %v649_v3  ;;  %641 = vmatpush3.bf16.msra.mxu1 %v649_v3 }
  0x10   :  { %606 = vmatprep.subr.bf16.mxu0 %v650_v5  ;;  %634 = vmatprep.subr.bf16.mxu1 %v650_v5 }
  0x13   :  { %607 = vmatpush3.bf16.msra.mxu0 %v650_v5  ;;  %642 = vmatpush3.bf16.msra.mxu1 %v650_v5 }
  0x14   :  { %608 = vmatprep.subr.bf16.mxu0 %v651_v7  ;;  %635 = vmatprep.subr.bf16.mxu1 %v651_v7 }
  0x17   :  { %609 = vmatpush3.bf16.msra.mxu0 %v651_v7  ;;  %643 = vmatpush3.bf16.msra.mxu1 %v651_v7 }
  0x18   :  { %610 = vmatprep.subr.bf16.mxu0 %v652_v8  ;;  %636 = vmatprep.subr.bf16.mxu1 %v652_v8 }
  0x1b   :  { %611 = vmatpush3.bf16.msra.mxu0 %v652_v8  ;;  %644 = vmatpush3.bf16.msra.mxu1 %v652_v8 }
  0x1c   :  { %612 = vmatprep.subr.bf16.mxu0 %v653_v9  ;;  %637 = vmatprep.subr.bf16.mxu1 %v653_v9 }
  0x1f   :  { %613 = vmatpush3.bf16.msra.mxu0 %v653_v9  ;;  %645 = vmatpush3.bf16.msra.mxu1 %v653_v9 }
  0x22   :  { %615 = vmatmul.mubr.bf16.vlgmr.msra.gmra.mrb[0].mxu0 %v655_v10  ;;  %623 = vmatmul.mubr.bf16.vlgmr.msra.gmra.mrb[0].mxu1 %v659_v11 }
  0x23   :  { %618 = vmatprep.mubr.bf16.mxu0 %v656_v12  ;;  %626 = vmatprep.mubr.bf16.mxu1 %v660_v13 }
  0x2a   :  { %619 = vmatmul.mubr.bf16.gmra.mrb[4].mxu0 %v657_v14  ;;  %627 = vmatmul.mubr.bf16.gmra.mrb[4].mxu1 %v661_v15 }
  0xf5   :  { %v616_v16 = vpop.f32.mrb[0].mxu0  ;;  %v624_v17 = vpop.f32.mrb[0].mxu1 }
  0xf6   :  { %v176_v18 = vpop.f32.mrb[1].mxu0  ;;  %v208_v19 = vpop.f32.mrb[1].mxu1  ;;  %v361_v31 = vmul.f32 %v616_v16, %v616_v16  ;;  %v369_v3 = vmul.f32 %v624_v17, %v624_v17 }
  0xf7   :  { %v617_v20 = vpop.f32.mrb[2].mxu0  ;;  %v625_v21 = vpop.f32.mrb[2].mxu1  ;;  %v359_v26 = vmul.f32 %v176_v18, %v176_v18  ;;  %v367_v61 = vmul.f32 %v208_v19, %v208_v19 }
  0xf8   :  { %v543_v22 = vpack.c.bf16 %v617_v20, %v616_v16  ;;  %v179_v23 = vpop.f32.mrb[3].mxu0  ;;  %v563_v24 = vpack.c.bf16 %v625_v21, %v624_v17  ;;  %v211_v25 = vpop.f32.mrb[3].mxu1  ;;  %v362_v34 = vmul.f32 %v617_v20, %v617_v20  ;;  %v370_v6 = vmul.f32 %v625_v21, %v625_v21 }
  0xf9   :  { %v338_v27 = vadd.f32 %v179_v23, %v176_v18  ;;  %v360_v28 = vmul.f32 %v179_v23, %v179_v23  ;;  %v538_v29 = vpack.c.bf16 %v179_v23, %v176_v18  ;;  %v558_v30 = vpack.c.bf16 %v211_v25, %v208_v19 }
  0xfa   :  { %575 = vst [vmem:[%s759_s2 + $0x8] sm:$0xff] %v543_v22   ;;  %579 = vst [vmem:[%s759_s2 + $0x28] sm:$0xff] %v563_v24   ;;  %v368_v2 = vmul.f32 %v211_v25, %v211_v25 }
  0xfb   :  { %v339_v32 = vadd.f32 %v616_v16, %v338_v27  ;;  %v375_v33 = vadd.f32 %v360_v28, %v359_v26  ;;  %539 = vst [vmem:[%s759_s2] sm:$0xff] %v538_v29   ;;  %578 = vst [vmem:[%s759_s2 + $0x20] sm:$0xff] %v558_v30  }
  0xfd   :  { %v376_v35 = vadd.f32 %v375_v33, %v361_v31  ;;  %v620_v36 = vpop.f32.mrb[4].mxu0  ;;  %v340_v37 = vadd.f32 %v617_v20, %v339_v32  ;;  %v628_v38 = vpop.f32.mrb[4].mxu1 }
  0xfe   :  { %v192_v39 = vpop.f32.mrb[5].mxu0  ;;  %v224_v40 = vpop.f32.mrb[5].mxu1  ;;  %v365_v55 = vmul.f32 %v620_v36, %v620_v36  ;;  %v373_v15 = vmul.f32 %v628_v38, %v628_v38 }
  0xff   :  { %v341_v41 = vadd.f32 %v340_v37, %v192_v39  ;;  %v363_v42 = vmul.f32 %v192_v39, %v192_v39  ;;  %v377_v43 = vadd.f32 %v376_v35, %v362_v34  ;;  %v621_v44 = vpop.f32.mrb[6].mxu0  ;;  %v629_v45 = vpop.f32.mrb[6].mxu1  ;;  %v371_v9 = vmul.f32 %v224_v40, %v224_v40 }
 0x100   :  { %v553_v46 = vpack.c.bf16 %v621_v44, %v620_v36  ;;  %v195_v47 = vpop.f32.mrb[7].mxu0  ;;  %v573_v48 = vpack.c.bf16 %v629_v45, %v628_v38  ;;  %v227_v49 = vpop.f32.mrb[7].mxu1  ;;  %v366_v58 = vmul.f32 %v621_v44, %v621_v44 }
 0x101   :  { %v378_v50 = vadd.f32 %v377_v43, %v363_v42  ;;  %v342_v51 = vadd.f32 %v341_v41, %v195_v47  ;;  %v364_v52 = vmul.f32 %v195_v47, %v195_v47  ;;  %v548_v53 = vpack.c.bf16 %v195_v47, %v192_v39 }
 0x102   :  { %577 = vst [vmem:[%s759_s2 + $0x18] sm:$0xff] %v553_v46   ;;  %581 = vst [vmem:[%s759_s2 + $0x38] sm:$0xff] %v573_v48   ;;  %v568_v54 = vpack.c.bf16 %v227_v49, %v224_v40  ;;  %v372_v14 = vmul.f32 %v227_v49, %v227_v49 }
 0x103   :  { %v343_v56 = vadd.f32 %v620_v36, %v342_v51  ;;  %v379_v57 = vadd.f32 %v378_v50, %v364_v52  ;;  %576 = vst [vmem:[%s759_s2 + $0x10] sm:$0xff] %v548_v53  }
 0x104   :  { %580 = vst [vmem:[%s759_s2 + $0x30] sm:$0xff] %v568_v54  }
 0x105   :  { %v380_v59 = vadd.f32 %v379_v57, %v365_v55  ;;  %v344_v60 = vadd.f32 %v621_v44, %v343_v56 }
 0x107   :  { %v345_v62 = vadd.f32 %v344_v60, %v208_v19  ;;  %v381_v63 = vadd.f32 %v380_v59, %v366_v58  ;;  %v374_v19 = vmul.f32 %v629_v45, %v629_v45 }
 0x109   :  { %v382_v0 = vadd.f32 %v381_v63, %v367_v61  ;;  %v346_v1 = vadd.f32 %v345_v62, %v211_v25 }
 0x10b   :  { %v347_v4 = vadd.f32 %v624_v17, %v346_v1  ;;  %v383_v5 = vadd.f32 %v382_v0, %v368_v2 }
 0x10d   :  { %v384_v7 = vadd.f32 %v383_v5, %v369_v3  ;;  %v348_v8 = vadd.f32 %v625_v21, %v347_v4 }
 0x10f   :  { %v349_v10 = vadd.f32 %v348_v8, %v224_v40  ;;  %v385_v11 = vadd.f32 %v384_v7, %v370_v6 }
 0x111   :  { %v386_v12 = vadd.f32 %v385_v11, %v371_v9  ;;  %v350_v13 = vadd.f32 %v349_v10, %v227_v49 }
 0x113   :  { %v351_v16 = vadd.f32 %v628_v38, %v350_v13  ;;  %v387_v18 = vadd.f32 %v386_v12, %v372_v14 }
 0x115   :  { %v352_v20 = vadd.f32 %v629_v45, %v351_v16  ;;  %v388_v22 = vadd.f32 %v387_v18, %v373_v15 }
 0x117   :  { %v353_v23 = vrot.slane %v352_v20, 4  ;;  %v389_v24 = vadd.f32 %v388_v22, %v374_v19 }
 0x119   :  { %v354_v25 = vadd.f32 %v353_v23, %v352_v20  ;;  %v390_v17 = vrot.slane %v389_v24, 4 }
 0x11b   :  { %v355_v26 = vrot.slane %v354_v25, 2  ;;  %v391_v27 = vadd.f32 %v390_v17, %v389_v24 }
 0x11d   :  { %v356_v28 = vadd.f32 %v355_v26, %v354_v25  ;;  %v392_v21 = vrot.slane %v391_v27, 2 }
 0x11f   :  { %v357_v29 = vrot.slane %v356_v28, 1  ;;  %v393_v30 = vadd.f32 %v392_v21, %v391_v27 }
 0x121   :  { %v394_v31 = vrot.slane %v393_v30, 1  ;;  %v358_v32 = vadd.f32 %v357_v29, %v356_v28 }
 0x123   :  { %v395_v33 = vadd.f32 %v394_v31, %v393_v30 }
 0x125   :  { %v397_v34 = vsel %vm396_vm0, %v358_v32, %v395_v33 }
 0x126   :  { %398 = vst [vmem:[%s760_s3] sm:$0x3] %v397_v34 }

// kernel: nlayer_discriminator_forward.11
= control target key start
LH: loop header
LB: loop body
LE: loop exit
PB: predicated region body
PF: predicated region fallthrough
CT: control target
= control target key end

     0   :  { %vm264_vm0 = vcmask 1040384   ;;  %s489_s1 = inlined_call_operand.vmem [shape: bf16[256,128], index: 1, kind: input, shape index: {}]   ;;  %s490_s0 = inlined_call_operand.vmem [shape: bf16[32,256], index: 0, kind: input, shape index: {}]   ;;  %s491_s2 = inlined_call_operand.vmem [shape: bf16[32,128], index: 2, kind: output, shape index: {0}]   ;;  %s492_s3 = inlined_call_operand.vmem [shape: f32[1,2,128], index: 3, kind: output, shape index: {1}]  }
   0x1   :  { %v378_v0 = vld [vmem:[%s489_s1 + $0x40] sm:$0xff]   ;;  %v380_v2 = vld [vmem:[%s489_s1 + $0x48] sm:$0xff]   ;;  %v382_v4 = vld [vmem:[%s489_s1 + $0x50] sm:$0xff]  }
   0x2   :  { %v379_v1 = vld [vmem:[%s489_s1] sm:$0xff]   ;;  %334 = vmatprep.subr.bf16.mxu0 %v378_v0  ;;  %362 = vmatprep.subr.bf16.mxu1 %v378_v0  ;;  %v381_v3 = vld [vmem:[%s489_s1 + $0x8] sm:$0xff]   ;;  %v383_v5 = vld [vmem:[%s489_s1 + $0x10] sm:$0xff]  }
   0x3   :  { %335 = vmatpush3.bf16.msra.mxu0 %v379_v1  ;;  %370 = vmatpush3.bf16.msra.mxu1 %v379_v1  ;;  %v384_v6 = vld [vmem:[%s489_s1 + $0x58] sm:$0xff]   ;;  %v386_v8 = vld [vmem:[%s489_s1 + $0x60] sm:$0xff]   ;;  %v388_v10 = vld [vmem:[%s489_s1 + $0x68] sm:$0xff]  }
   0x4   :  { %336 = vmatprep.subr.bf16.mxu0 %v380_v2  ;;  %363 = vmatprep.subr.bf16.mxu1 %v380_v2  ;;  %v385_v7 = vld [vmem:[%s489_s1 + $0x18] sm:$0xff]   ;;  %v387_v9 = vld [vmem:[%s489_s1 + $0x20] sm:$0xff]   ;;  %v389_v13 = vld [vmem:[%s489_s1 + $0x28] sm:$0xff]  }
   0x5   :  { %v396_v11 = vld [vmem:[%s490_s0 + $0x4] ss:$8 sps:$4 sm:$0xff]   ;;  %v399_v12 = vld [vmem:[%s490_s0 + $0x14] ss:$8 sps:$4 sm:$0xff]   ;;  %v394_v18 = vld [vmem:[%s490_s0] ss:$8 sps:$4 sm:$0xff]  }
   0x6   :  { %v390_v14 = vld [vmem:[%s489_s1 + $0x70] sm:$0xff]   ;;  %198 = vmatprep.mubr.bf16.mxu0 %v396_v11  ;;  %206 = vmatprep.mubr.bf16.mxu1 %v399_v12  ;;  %v392_v16 = vld [vmem:[%s489_s1 + $0x78] sm:$0xff]  }
   0x7   :  { %337 = vmatpush3.bf16.msra.mxu0 %v381_v3  ;;  %371 = vmatpush3.bf16.msra.mxu1 %v381_v3  ;;  %v391_v15 = vld [vmem:[%s489_s1 + $0x30] sm:$0xff]   ;;  %v393_v17 = vld [vmem:[%s489_s1 + $0x38] sm:$0xff]  }
   0x8   :  { %338 = vmatprep.subr.bf16.mxu0 %v382_v4  ;;  %364 = vmatprep.subr.bf16.mxu1 %v382_v4  ;;  %v397_v19 = vld [vmem:[%s490_s0 + $0x10] ss:$8 sps:$4 sm:$0xff]  }
   0xb   :  { %339 = vmatpush3.bf16.msra.mxu0 %v383_v5  ;;  %372 = vmatpush3.bf16.msra.mxu1 %v383_v5 }
   0xc   :  { %340 = vmatprep.subr.bf16.mxu0 %v384_v6  ;;  %365 = vmatprep.subr.bf16.mxu1 %v384_v6 }
   0xf   :  { %341 = vmatpush3.bf16.msra.mxu0 %v385_v7  ;;  %373 = vmatpush3.bf16.msra.mxu1 %v385_v7 }
  0x10   :  { %342 = vmatprep.subr.bf16.mxu0 %v386_v8  ;;  %366 = vmatprep.subr.bf16.mxu1 %v386_v8 }
  0x13   :  { %343 = vmatpush3.bf16.msra.mxu0 %v387_v9  ;;  %374 = vmatpush3.bf16.msra.mxu1 %v387_v9 }
  0x14   :  { %344 = vmatprep.subr.bf16.mxu0 %v388_v10  ;;  %367 = vmatprep.subr.bf16.mxu1 %v388_v10 }
  0x17   :  { %345 = vmatpush3.bf16.msra.mxu0 %v389_v13  ;;  %375 = vmatpush3.bf16.msra.mxu1 %v389_v13 }
  0x18   :  { %346 = vmatprep.subr.bf16.mxu0 %v390_v14  ;;  %368 = vmatprep.subr.bf16.mxu1 %v390_v14 }
  0x1b   :  { %347 = vmatpush3.bf16.msra.mxu0 %v391_v15  ;;  %376 = vmatpush3.bf16.msra.mxu1 %v391_v15 }
  0x1c   :  { %348 = vmatprep.subr.bf16.mxu0 %v392_v16  ;;  %369 = vmatprep.subr.bf16.mxu1 %v392_v16 }
  0x1f   :  { %349 = vmatpush3.bf16.msra.mxu0 %v393_v17  ;;  %377 = vmatpush3.bf16.msra.mxu1 %v393_v17 }
  0x22   :  { %199 = vmatmul.mubr.bf16.vlgmr.msra.gmra.mrb[0].mxu0 %v394_v18  ;;  %207 = vmatmul.mubr.bf16.vlgmr.msra.gmra.mrb[0].mxu1 %v397_v19 }
  0xf5   :  { %v350_v20 = vpop.f32.mrb[0].mxu0  ;;  %v356_v21 = vpop.f32.mrb[0].mxu1 }
  0xf6   :  { %v351_v22 = vpop.f32.mrb[1].mxu0  ;;  %v357_v23 = vpop.f32.mrb[1].mxu1 }
  0xf7   :  { %v352_v24 = vadd.f32 %v351_v22, %v350_v20  ;;  %v353_v25 = vpop.f32.mrb[2].mxu0  ;;  %v358_v26 = vadd.f32 %v357_v23, %v356_v21  ;;  %v359_v27 = vpop.f32.mrb[2].mxu1 }
  0xf8   :  { %v354_v28 = vpop.f32.mrb[3].mxu0  ;;  %v360_v29 = vpop.f32.mrb[3].mxu1 }
  0xf9   :  { %v355_v30 = vadd.f32 %v354_v28, %v353_v25  ;;  %v361_v31 = vadd.f32 %v360_v29, %v359_v27  ;;  %v251_v32 = vmul.f32 %v352_v24, %v352_v24  ;;  %v253_v33 = vmul.f32 %v358_v26, %v358_v26 }
  0xfb   :  { %v242_v34 = vadd.f32 %v355_v30, %v352_v24  ;;  %v252_v35 = vmul.f32 %v355_v30, %v355_v30  ;;  %v326_v36 = vpack.c.bf16 %v355_v30, %v352_v24  ;;  %v331_v37 = vpack.c.bf16 %v361_v31, %v358_v26 }
  0xfc   :  { %v254_v41 = vmul.f32 %v361_v31, %v361_v31 }
  0xfd   :  { %v255_v38 = vadd.f32 %v252_v35, %v251_v32  ;;  %327 = vst [vmem:[%s491_s2] sm:$0xff] %v326_v36   ;;  %v243_v39 = vadd.f32 %v358_v26, %v242_v34  ;;  %333 = vst [vmem:[%s491_s2 + $0x8] sm:$0xff] %v331_v37  }
  0xff   :  { %v244_v40 = vadd.f32 %v361_v31, %v243_v39  ;;  %v256_v42 = vadd.f32 %v255_v38, %v253_v33 }
 0x101   :  { %v245_v43 = vrot.slane %v244_v40, 4  ;;  %v257_v44 = vadd.f32 %v256_v42, %v254_v41 }
 0x103   :  { %v246_v45 = vadd.f32 %v245_v43, %v244_v40  ;;  %v258_v46 = vrot.slane %v257_v44, 4 }
 0x105   :  { %v247_v47 = vrot.slane %v246_v45, 2  ;;  %v259_v48 = vadd.f32 %v258_v46, %v257_v44 }
 0x107   :  { %v248_v49 = vadd.f32 %v247_v47, %v246_v45  ;;  %v260_v50 = vrot.slane %v259_v48, 2 }
 0x109   :  { %v249_v51 = vrot.slane %v248_v49, 1  ;;  %v261_v52 = vadd.f32 %v260_v50, %v259_v48 }
 0x10b   :  { %v262_v53 = vrot.slane %v261_v52, 1  ;;  %v250_v54 = vadd.f32 %v249_v51, %v248_v49 }
 0x10d   :  { %v263_v55 = vadd.f32 %v262_v53, %v261_v52 }
 0x10f   :  { %v265_v56 = vsel %vm264_vm0, %v250_v54, %v263_v55 }
 0x110   :  { %266 = vst [vmem:[%s492_s3] sm:$0x3] %v265_v56 }

// kernel: nlayer_discriminator_forward.12
= control target key start
LH: loop header
LB: loop body
LE: loop exit
PB: predicated region body
PF: predicated region fallthrough
CT: control target
= control target key end

     0   :  { %s148_s0 = inlined_call_operand.vmem [shape: bf16[32,128], index: 0, kind: input, shape index: {}]   ;;  %s149_s1 = inlined_call_operand.vmem [shape: f32[1,128], index: 1, kind: input, shape index: {}]   ;;  %s150_s2 = inlined_call_operand.vmem [shape: f32[1,128], index: 2, kind: input, shape index: {}]   ;;  %s151_s3 = inlined_call_operand.vmem [shape: bf16[32,128], index: 3, kind: output, shape index: {}]  }
   0x1   :  { %v91_v0 = vld [vmem:[%s148_s0] sm:$0xff]   ;;  %v108_v4 = vld [vmem:[%s148_s0 + $0x8] sm:$0xff]  }
   0x2   :  { %v80_v1 = vld [vmem:[%s149_s1] ss:$0 sm:$0xff]  ;;  %v92_v2 = vunpack.c.l.bf16 %v91_v0  ;;  %v93_v3 = vunpack.c.h.bf16 %v91_v0  ;;  %v96_v6 = vunpack.c.l.bf16 %v108_v4  ;;  %v97_v7 = vunpack.c.h.bf16 %v108_v4 }
   0x3   :  { %v81_v5 = vld [vmem:[%s150_s2] ss:$0 sm:$0xff] }
   0x4   :  { %v29_v8 = vmul.f32 %v92_v2, %v80_v1  ;;  %v30_v9 = vmul.f32 %v93_v3, %v80_v1  ;;  %v31_v10 = vmul.f32 %v96_v6, %v80_v1  ;;  %v32_v11 = vmul.f32 %v97_v7, %v80_v1 }
   0x6   :  { %v40_v12 = vadd.f32 %v81_v5, %v29_v8  ;;  %v41_v13 = vadd.f32 %v81_v5, %v30_v9  ;;  %v42_v14 = vadd.f32 %v81_v5, %v31_v10  ;;  %v43_v15 = vadd.f32 %v81_v5, %v32_v11 }
   0x8   :  { %vm44_vm0 = vcmp.ge.f32.partialorder %v40_v12, 0.0  ;;  %vm45_vm1 = vcmp.ge.f32.partialorder %v41_v13, 0.0  ;;  %v48_v16 = vmul.f32 0.2, %v40_v12  ;;  %v49_v17 = vmul.f32 0.2, %v41_v13 }
   0x9   :  { %vm46_vm2 = vcmp.ge.f32.partialorder %v42_v14, 0.0  ;;  %vm47_vm3 = vcmp.ge.f32.partialorder %v43_v15, 0.0  ;;  %v50_v18 = vmul.f32 0.2, %v42_v14  ;;  %v51_v19 = vmul.f32 0.2, %v43_v15 }
   0xa   :  { %v52_v20 = vsel %vm44_vm0, %v40_v12, %v48_v16  ;;  %v53_v21 = vsel %vm45_vm1, %v41_v13, %v49_v17 }
   0xb   :  { %v101_v22 = vpack.c.bf16 %v53_v21, %v52_v20  ;;  %v54_v23 = vsel %vm46_vm2, %v42_v14, %v50_v18  ;;  %v55_v24 = vsel %vm47_vm3, %v43_v15, %v51_v19 }
   0xc   :  { %v106_v25 = vpack.c.bf16 %v55_v24, %v54_v23 }
   0xd   :  { %102 = vst [vmem:[%s151_s3] sm:$0xff] %v101_v22  }
   0xe   :  { %109 = vst [vmem:[%s151_s3 + $0x8] sm:$0xff] %v106_v25  }

// kernel: nlayer_discriminator_forward.14
= control target key start
LH: loop header
LB: loop body
LE: loop exit
PB: predicated region body
PF: predicated region fallthrough
CT: control target
= control target key end

     0   :  { %s124_s0 = inlined_call_operand.vmem [shape: bf16[24,128], index: 0, kind: input, shape index: {}]   ;;  %s125_s1 = inlined_call_operand.vmem [shape: f32[1,128], index: 1, kind: input, shape index: {}]   ;;  %s126_s2 = inlined_call_operand.vmem [shape: f32[1,128], index: 2, kind: input, shape index: {}]   ;;  %s127_s3 = inlined_call_operand.vmem [shape: bf16[24,128], index: 3, kind: output, shape index: {}]  }
   0x1   :  { %v78_v0 = vld [vmem:[%s124_s0] sm:$0xff]   ;;  %v16_v4 = vld [vmem:[%s124_s0 + $0x8] sm:$0xf] }
   0x2   :  { %v69_v1 = vld [vmem:[%s125_s1] ss:$0 sm:$0xff]  ;;  %v79_v2 = vunpack.c.l.bf16 %v78_v0  ;;  %v80_v3 = vunpack.c.h.bf16 %v78_v0  ;;  %v19_v6 = vunpack.c.l.bf16 %v16_v4 }
   0x3   :  { %v70_v5 = vld [vmem:[%s126_s2] ss:$0 sm:$0xff] }
   0x4   :  { %v27_v7 = vmul.f32 %v79_v2, %v69_v1  ;;  %v28_v8 = vmul.f32 %v80_v3, %v69_v1  ;;  %v29_v9 = vmul.f32 %v69_v1, %v19_v6 }
   0x6   :  { %v37_v10 = vadd.f32 %v70_v5, %v27_v7  ;;  %v38_v11 = vadd.f32 %v70_v5, %v28_v8  ;;  %v39_v12 = vadd.f32 %v70_v5, %v29_v9 }
   0x8   :  { %vm40_vm0 = vcmp.ge.f32.partialorder %v37_v10, 0.0  ;;  %vm41_vm1 = vcmp.ge.f32.partialorder %v38_v11, 0.0  ;;  %v43_v13 = vmul.f32 0.2, %v37_v10  ;;  %v44_v14 = vmul.f32 0.2, %v38_v11 }
   0x9   :  { %vm42_vm2 = vcmp.ge.f32.partialorder %v39_v12, 0.0  ;;  %v45_v15 = vmul.f32 0.2, %v39_v12 }
   0xa   :  { %v46_v16 = vsel %vm40_vm0, %v37_v10, %v43_v13  ;;  %v47_v17 = vsel %vm41_vm1, %v38_v11, %v44_v14 }
   0xb   :  { %v84_v18 = vpack.c.bf16 %v47_v17, %v46_v16  ;;  %v48_v19 = vsel %vm42_vm2, %v39_v12, %v45_v15 }
   0xc   :  { %v76_v20 = vpack.c.bf16 %v48_v19, %v48_v19 }
   0xd   :  { %85 = vst [vmem:[%s127_s3] sm:$0xff] %v84_v18  }
   0xe   :  { %64 = vst [vmem:[%s127_s3 + $0x8] sm:$0xf] %v76_v20 }

// kernel: nlayer_discriminator_forward.13
= control target key start
LH: loop header
LB: loop body
LE: loop exit
PB: predicated region body
PF: predicated region fallthrough
CT: control target
= control target key end

     0   :  { %v407_v43 = vlaneseq  ;;  %vm446_vm1 = vcmask 1040384   ;;  %s765_s1 = inlined_call_operand.vmem [shape: bf16[512,128], index: 1, kind: input, shape index: {}]   ;;  %s766_s0 = inlined_call_operand.vmem [shape: bf16[24,512], index: 0, kind: input, shape index: {}]   ;;  %s767_s2 = inlined_call_operand.vmem [shape: bf16[24,128], index: 2, kind: output, shape index: {0}]   ;;  %s768_s3 = inlined_call_operand.vmem [shape: f32[1,2,128], index: 3, kind: output, shape index: {1}]  }
   0x1   :  { %v580_v0 = vld [vmem:[%s765_s1 + $0x40] sm:$0xff]   ;;  %v584_v4 = vld [vmem:[%s765_s1 + $0x48] sm:$0xff]   ;;  %v588_v8 = vld [vmem:[%s765_s1 + $0x50] sm:$0xff]  }
   0x2   :  { %v581_v1 = vld [vmem:[%s765_s1 + $0xc0] sm:$0xff]   ;;  %524 = vmatprep.subr.bf16.mxu0 %v580_v0  ;;  %v585_v5 = vld [vmem:[%s765_s1 + $0xc8] sm:$0xff]   ;;  %v589_v9 = vld [vmem:[%s765_s1 + $0xd0] sm:$0xff]   ;;  %v408_v54 = vshrl.u32 %v407_v43, 7 }
   0x3   :  { %v582_v2 = vld [vmem:[%s765_s1] sm:$0xff]   ;;  %552 = vmatprep.subr.bf16.mxu1 %v581_v1  ;;  %v586_v6 = vld [vmem:[%s765_s1 + $0x8] sm:$0xff]   ;;  %v590_v10 = vld [vmem:[%s765_s1 + $0x10] sm:$0xff]  }
   0x4   :  { %v583_v3 = vld [vmem:[%s765_s1 + $0x80] sm:$0xff]   ;;  %525 = vmatpush3.bf16.msra.mxu0 %v582_v2  ;;  %v587_v7 = vld [vmem:[%s765_s1 + $0x88] sm:$0xff]   ;;  %v591_v11 = vld [vmem:[%s765_s1 + $0x90] sm:$0xff]   ;;  %v410_v59 = vadd.s32 16, %v408_v54 }
   0x5   :  { %553 = vmatpush3.bf16.msra.mxu1 %v583_v3  ;;  %526 = vmatprep.subr.bf16.mxu0 %v584_v4  ;;  %v592_v12 = vld [vmem:[%s765_s1 + $0x58] sm:$0xff]   ;;  %v596_v16 = vld [vmem:[%s765_s1 + $0x60] sm:$0xff]   ;;  %v600_v20 = vld [vmem:[%s765_s1 + $0x68] sm:$0xff]  }
   0x6   :  { %554 = vmatprep.subr.bf16.mxu1 %v585_v5  ;;  %v593_v13 = vld [vmem:[%s765_s1 + $0xd8] sm:$0xff]   ;;  %v597_v17 = vld [vmem:[%s765_s1 + $0xe0] sm:$0xff]   ;;  %v601_v21 = vld [vmem:[%s765_s1 + $0xe8] sm:$0xff]   ;;  %vm417_vm0 = vcmp.lt.s32.totalorder %v410_v59, 18 }
   0x7   :  { %v594_v14 = vld [vmem:[%s765_s1 + $0x18] sm:$0xff]   ;;  %v598_v18 = vld [vmem:[%s765_s1 + $0x20] sm:$0xff]   ;;  %v602_v22 = vld [vmem:[%s765_s1 + $0x28] sm:$0xff]  }
   0x8   :  { %527 = vmatpush3.bf16.msra.mxu0 %v586_v6  ;;  %v595_v15 = vld [vmem:[%s765_s1 + $0x98] sm:$0xff]   ;;  %v599_v19 = vld [vmem:[%s765_s1 + $0xa0] sm:$0xff]   ;;  %v603_v23 = vld [vmem:[%s765_s1 + $0xa8] sm:$0xff]  }
   0x9   :  { %555 = vmatpush3.bf16.msra.mxu1 %v587_v7  ;;  %528 = vmatprep.subr.bf16.mxu0 %v588_v8  ;;  %v604_v24 = vld [vmem:[%s765_s1 + $0x70] sm:$0xff]   ;;  %v608_v28 = vld [vmem:[%s765_s1 + $0x78] sm:$0xff]   ;;  %v18_v36 = vld [vmem:[%s766_s0 + $0x20] sm:$0xff] }
   0xa   :  { %556 = vmatprep.subr.bf16.mxu1 %v589_v9  ;;  %v605_v25 = vld [vmem:[%s765_s1 + $0xf0] sm:$0xff]   ;;  %v609_v29 = vld [vmem:[%s765_s1 + $0xf8] sm:$0xff]   ;;  %v478_v37 = vcombine.high %v18_v36, %v18_v36  ;;  %v19_v38 = vld [vmem:[%s766_s0 + $0x28] sm:$0xff]  ;;  %v477_v40 = vcombine.low %v18_v36, %v18_v36 }
   0xb   :  { %v606_v26 = vld [vmem:[%s765_s1 + $0x30] sm:$0xff]   ;;  %v610_v30 = vld [vmem:[%s765_s1 + $0x38] sm:$0xff]   ;;  %v480_v39 = vcombine.high %v19_v38, %v19_v38  ;;  %v479_v41 = vcombine.low %v19_v38, %v19_v38 }
   0xc   :  { %529 = vmatpush3.bf16.msra.mxu0 %v590_v10  ;;  %v607_v27 = vld [vmem:[%s765_s1 + $0xb0] sm:$0xff]   ;;  %v611_v31 = vld [vmem:[%s765_s1 + $0xb8] sm:$0xff]  }
   0xd   :  { %557 = vmatpush3.bf16.msra.mxu1 %v591_v11  ;;  %530 = vmatprep.subr.bf16.mxu0 %v592_v12  ;;  %v612_v32 = vld [vmem:[%s766_s0] ss:$16 sps:$4 sm:$0xff]   ;;  %v614_v33 = vld [vmem:[%s766_s0 + $0x4] ss:$16 sps:$4 sm:$0xff]   ;;  %v615_v34 = vld [vmem:[%s766_s0 + $0x8] ss:$16 sps:$4 sm:$0xff]  }
   0xe   :  { %558 = vmatprep.subr.bf16.mxu1 %v593_v13  ;;  %v617_v35 = vld [vmem:[%s766_s0 + $0xc] ss:$16 sps:$4 sm:$0xff]   ;;  %342 = vmatprep.mubr.bf16.mxu0 %v614_v33 }
   0xf   :  { %390 = vmatprep.mubr.bf16.mxu1 %v617_v35 }
  0x10   :  { %531 = vmatpush3.bf16.msra.mxu0 %v594_v14 }
  0x11   :  { %559 = vmatpush3.bf16.msra.mxu1 %v595_v15  ;;  %532 = vmatprep.subr.bf16.mxu0 %v596_v16 }
  0x12   :  { %560 = vmatprep.subr.bf16.mxu1 %v597_v17 }
  0x14   :  { %533 = vmatpush3.bf16.msra.mxu0 %v598_v18 }
  0x15   :  { %561 = vmatpush3.bf16.msra.mxu1 %v599_v19  ;;  %534 = vmatprep.subr.bf16.mxu0 %v600_v20 }
  0x16   :  { %562 = vmatprep.subr.bf16.mxu1 %v601_v21 }
  0x18   :  { %535 = vmatpush3.bf16.msra.mxu0 %v602_v22 }
  0x19   :  { %563 = vmatpush3.bf16.msra.mxu1 %v603_v23  ;;  %536 = vmatprep.subr.bf16.mxu0 %v604_v24 }
  0x1a   :  { %564 = vmatprep.subr.bf16.mxu1 %v605_v25 }
  0x1c   :  { %537 = vmatpush3.bf16.msra.mxu0 %v606_v26 }
  0x1d   :  { %565 = vmatpush3.bf16.msra.mxu1 %v607_v27  ;;  %538 = vmatprep.subr.bf16.mxu0 %v608_v28 }
  0x1e   :  { %566 = vmatprep.subr.bf16.mxu1 %v609_v29 }
  0x20   :  { %539 = vmatpush3.bf16.msra.mxu0 %v610_v30 }
  0x21   :  { %567 = vmatpush3.bf16.msra.mxu1 %v611_v31 }
  0x23   :  { %343 = vmatmul.mubr.bf16.vlgmr.msra.gmra.mrb[0].mxu0 %v612_v32 }
  0x24   :  { %391 = vmatmul.mubr.bf16.vlgmr.msra.gmra.mrb[0].mxu1 %v615_v34  ;;  %350 = vmatprep.mubr.bf16.mxu0 %v478_v37 }
  0x25   :  { %398 = vmatprep.mubr.bf16.mxu1 %v480_v39 }
  0x2b   :  { %351 = vmatmul.mubr.bf16.gmra.mrb[4].mxu0 %v477_v40 }
  0x2c   :  { %399 = vmatmul.mubr.bf16.gmra.mrb[4].mxu1 %v479_v41 }
  0xf6   :  { %v540_v42 = vpop.f32.mrb[0].mxu0 }
  0xf7   :  { %v568_v44 = vpop.f32.mrb[0].mxu1  ;;  %v541_v45 = vpop.f32.mrb[1].mxu0 }
  0xf8   :  { %v542_v46 = vadd.f32 %v541_v45, %v540_v42  ;;  %v569_v47 = vpop.f32.mrb[1].mxu1  ;;  %v543_v48 = vpop.f32.mrb[2].mxu0 }
  0xf9   :  { %v570_v49 = vadd.f32 %v569_v47, %v568_v44  ;;  %v571_v50 = vpop.f32.mrb[2].mxu1  ;;  %v544_v51 = vpop.f32.mrb[3].mxu0 }
  0xfa   :  { %v545_v52 = vadd.f32 %v544_v51, %v543_v48  ;;  %v572_v53 = vpop.f32.mrb[3].mxu1 }
  0xfb   :  { %v393_v55 = vadd.f32 %v570_v49, %v542_v46  ;;  %v573_v56 = vadd.f32 %v572_v53, %v571_v50 }
  0xfd   :  { %v396_v57 = vadd.f32 %v573_v56, %v545_v52  ;;  %v435_v60 = vmul.f32 %v393_v55, %v393_v55 }
  0xfe   :  { %v546_v58 = vpop.f32.mrb[4].mxu0 }
  0xff   :  { %v427_v61 = vadd.f32 %v396_v57, %v393_v55  ;;  %v436_v62 = vmul.f32 %v396_v57, %v396_v57  ;;  %v522_v63 = vpack.c.bf16 %v396_v57, %v393_v55  ;;  %v574_v0 = vpop.f32.mrb[4].mxu1  ;;  %v547_v1 = vpop.f32.mrb[5].mxu0 }
 0x100   :  { %v548_v2 = vadd.f32 %v547_v1, %v546_v58  ;;  %v575_v3 = vpop.f32.mrb[5].mxu1  ;;  %v549_v4 = vpop.f32.mrb[6].mxu0 }
 0x101   :  { %v438_v5 = vadd.f32 %v436_v62, %v435_v60  ;;  %v576_v6 = vadd.f32 %v575_v3, %v574_v0  ;;  %523 = vst [vmem:[%s767_s2] sm:$0xff] %v522_v63   ;;  %v577_v7 = vpop.f32.mrb[6].mxu1  ;;  %v550_v8 = vpop.f32.mrb[7].mxu0 }
 0x102   :  { %v578_v9 = vpop.f32.mrb[7].mxu1 }
 0x103   :  { %v401_v10 = vadd.f32 %v576_v6, %v548_v2 }
 0x105   :  { %v426_v11 = vsel %vm417_vm0, %v401_v10, 0.0  ;;  %v518_v12 = vpack.c.bf16 %v401_v10, %v401_v10 }
 0x106   :  { %v428_v13 = vadd.f32 %v427_v61, %v426_v11  ;;  %v437_v14 = vmul.f32 %v426_v11, %v426_v11 }
 0x107   :  { %464 = vst [vmem:[%s767_s2 + $0x8] sm:$0xf] %v518_v12 }
 0x108   :  { %v429_v15 = vrot.slane %v428_v13, 4  ;;  %v439_v16 = vadd.f32 %v438_v5, %v437_v14 }
 0x10a   :  { %v430_v17 = vadd.f32 %v429_v15, %v428_v13  ;;  %v440_v18 = vrot.slane %v439_v16, 4 }
 0x10c   :  { %v431_v19 = vrot.slane %v430_v17, 2  ;;  %v441_v20 = vadd.f32 %v440_v18, %v439_v16 }
 0x10e   :  { %v432_v21 = vadd.f32 %v431_v19, %v430_v17  ;;  %v442_v22 = vrot.slane %v441_v20, 2 }
 0x110   :  { %v433_v23 = vrot.slane %v432_v21, 1  ;;  %v443_v24 = vadd.f32 %v442_v22, %v441_v20 }
 0x112   :  { %v444_v25 = vrot.slane %v443_v24, 1  ;;  %v434_v26 = vadd.f32 %v433_v23, %v432_v21 }
 0x114   :  { %v445_v27 = vadd.f32 %v444_v25, %v443_v24 }
 0x116   :  { %v447_v28 = vsel %vm446_vm1, %v434_v26, %v445_v27 }
 0x117   :  { %448 = vst [vmem:[%s768_s3] sm:$0x3] %v447_v28 }

// kernel: nlayer_discriminator_forward.15
= control target key start
LH: loop header
LB: loop body
LE: loop exit
PB: predicated region body
PF: predicated region fallthrough
CT: control target
= control target key end

     0   :  { %s1194_s1 = inlined_call_operand.vmem [shape: bf16[1024,128], index: 1, kind: input, shape index: {}]   ;;  %s1195_s0 = inlined_call_operand.vmem [shape: bf16[8,1024], index: 0, kind: input, shape index: {}]   ;;  %s1196_s2 = inlined_call_operand.vmem [shape: f32[1,128], index: 2, kind: input, shape index: {}]   ;;  %s1197_s3 = inlined_call_operand.vmem [shape: f32[8,128], index: 3, kind: output, shape index: {}]  }
   0x1   :  { %v892_v0 = vld [vmem:[%s1194_s1 + $0x40] sm:$0xff]   ;;  %v896_v4 = vld [vmem:[%s1194_s1 + $0x48] sm:$0xff]   ;;  %v900_v8 = vld [vmem:[%s1194_s1 + $0x50] sm:$0xff]  }
   0x2   :  { %v893_v1 = vld [vmem:[%s1194_s1 + $0xc0] sm:$0xff]   ;;  %804 = vmatprep.subr.bf16.mxu0 %v892_v0  ;;  %v897_v5 = vld [vmem:[%s1194_s1 + $0xc8] sm:$0xff]   ;;  %v901_v9 = vld [vmem:[%s1194_s1 + $0xd0] sm:$0xff]  }
   0x3   :  { %v894_v2 = vld [vmem:[%s1194_s1] sm:$0xff]   ;;  %826 = vmatprep.subr.bf16.mxu1 %v893_v1  ;;  %v898_v6 = vld [vmem:[%s1194_s1 + $0x8] sm:$0xff]   ;;  %v902_v10 = vld [vmem:[%s1194_s1 + $0x10] sm:$0xff]  }
   0x4   :  { %v895_v3 = vld [vmem:[%s1194_s1 + $0x80] sm:$0xff]   ;;  %805 = vmatpush3.bf16.msra.mxu0 %v894_v2  ;;  %v899_v7 = vld [vmem:[%s1194_s1 + $0x88] sm:$0xff]   ;;  %v903_v11 = vld [vmem:[%s1194_s1 + $0x90] sm:$0xff]  }
   0x5   :  { %827 = vmatpush3.bf16.msra.mxu1 %v895_v3  ;;  %806 = vmatprep.subr.bf16.mxu0 %v896_v4  ;;  %v904_v12 = vld [vmem:[%s1194_s1 + $0x58] sm:$0xff]   ;;  %v908_v16 = vld [vmem:[%s1194_s1 + $0x60] sm:$0xff]   ;;  %v912_v20 = vld [vmem:[%s1194_s1 + $0x68] sm:$0xff]  }
   0x6   :  { %828 = vmatprep.subr.bf16.mxu1 %v897_v5  ;;  %v905_v13 = vld [vmem:[%s1194_s1 + $0xd8] sm:$0xff]   ;;  %v909_v17 = vld [vmem:[%s1194_s1 + $0xe0] sm:$0xff]   ;;  %v913_v21 = vld [vmem:[%s1194_s1 + $0xe8] sm:$0xff]  }
   0x7   :  { %v906_v14 = vld [vmem:[%s1194_s1 + $0x18] sm:$0xff]   ;;  %v910_v18 = vld [vmem:[%s1194_s1 + $0x20] sm:$0xff]   ;;  %v914_v22 = vld [vmem:[%s1194_s1 + $0x28] sm:$0xff]  }
   0x8   :  { %807 = vmatpush3.bf16.msra.mxu0 %v898_v6  ;;  %v907_v15 = vld [vmem:[%s1194_s1 + $0x98] sm:$0xff]   ;;  %v911_v19 = vld [vmem:[%s1194_s1 + $0xa0] sm:$0xff]   ;;  %v915_v23 = vld [vmem:[%s1194_s1 + $0xa8] sm:$0xff]  }
   0x9   :  { %829 = vmatpush3.bf16.msra.mxu1 %v899_v7  ;;  %808 = vmatprep.subr.bf16.mxu0 %v900_v8  ;;  %v916_v24 = vld [vmem:[%s1194_s1 + $0x70] sm:$0xff]   ;;  %v920_v28 = vld [vmem:[%s1194_s1 + $0x78] sm:$0xff]   ;;  %v15_v32 = vld [vmem:[%s1195_s0] sm:$0xff] }
   0xa   :  { %830 = vmatprep.subr.bf16.mxu1 %v901_v9  ;;  %v917_v25 = vld [vmem:[%s1194_s1 + $0xf0] sm:$0xff]   ;;  %v921_v29 = vld [vmem:[%s1194_s1 + $0xf8] sm:$0xff]   ;;  %v16_v33 = vld [vmem:[%s1195_s0 + $0x8] sm:$0xff]  ;;  %v732_v34 = vcombine.low %v15_v32, %v15_v32  ;;  %v733_v35 = vcombine.high %v15_v32, %v15_v32 }
   0xb   :  { %v918_v26 = vld [vmem:[%s1194_s1 + $0x30] sm:$0xff]   ;;  %v922_v30 = vld [vmem:[%s1194_s1 + $0x38] sm:$0xff]   ;;  %v734_v36 = vcombine.low %v16_v33, %v16_v33  ;;  %v735_v37 = vcombine.high %v16_v33, %v16_v33  ;;  %v928_v38 = vld [vmem:[%s1194_s1 + $0x140] sm:$0xff]  }
   0xc   :  { %809 = vmatpush3.bf16.msra.mxu0 %v902_v10  ;;  %v919_v27 = vld [vmem:[%s1194_s1 + $0xb0] sm:$0xff]   ;;  %v923_v31 = vld [vmem:[%s1194_s1 + $0xb8] sm:$0xff]   ;;  %v929_v39 = vld [vmem:[%s1194_s1 + $0x1c0] sm:$0xff]   ;;  %598 = vmatprep.mubr.bf16.mxu0 %v733_v35 }
   0xd   :  { %831 = vmatpush3.bf16.msra.mxu1 %v903_v11  ;;  %810 = vmatprep.subr.bf16.mxu0 %v904_v12  ;;  %v930_v40 = vld [vmem:[%s1194_s1 + $0x100] sm:$0xff]   ;;  %v932_v42 = vld [vmem:[%s1194_s1 + $0x148] sm:$0xff]   ;;  %v936_v46 = vld [vmem:[%s1194_s1 + $0x150] sm:$0xff]  }
   0xe   :  { %832 = vmatprep.subr.bf16.mxu1 %v905_v13  ;;  %638 = vmatprep.mubr.bf16.mxu1 %v735_v37  ;;  %v931_v41 = vld [vmem:[%s1194_s1 + $0x180] sm:$0xff]   ;;  %v933_v43 = vld [vmem:[%s1194_s1 + $0x1c8] sm:$0xff]   ;;  %v937_v47 = vld [vmem:[%s1194_s1 + $0x1d0] sm:$0xff]  }
   0xf   :  { %v934_v44 = vld [vmem:[%s1194_s1 + $0x108] sm:$0xff]   ;;  %v938_v48 = vld [vmem:[%s1194_s1 + $0x110] sm:$0xff]   ;;  %v940_v50 = vld [vmem:[%s1194_s1 + $0x158] sm:$0xff]  }
  0x10   :  { %811 = vmatpush3.bf16.msra.mxu0 %v906_v14  ;;  %v935_v45 = vld [vmem:[%s1194_s1 + $0x188] sm:$0xff]   ;;  %v939_v49 = vld [vmem:[%s1194_s1 + $0x190] sm:$0xff]   ;;  %v941_v51 = vld [vmem:[%s1194_s1 + $0x1d8] sm:$0xff]  }
  0x11   :  { %833 = vmatpush3.bf16.msra.mxu1 %v907_v15  ;;  %812 = vmatprep.subr.bf16.mxu0 %v908_v16  ;;  %v942_v52 = vld [vmem:[%s1194_s1 + $0x118] sm:$0xff]   ;;  %v944_v54 = vld [vmem:[%s1194_s1 + $0x160] sm:$0xff]   ;;  %v948_v58 = vld [vmem:[%s1194_s1 + $0x168] sm:$0xff]  }
  0x12   :  { %834 = vmatprep.subr.bf16.mxu1 %v909_v17  ;;  %v943_v53 = vld [vmem:[%s1194_s1 + $0x198] sm:$0xff]   ;;  %v945_v55 = vld [vmem:[%s1194_s1 + $0x1e0] sm:$0xff]   ;;  %v949_v59 = vld [vmem:[%s1194_s1 + $0x1e8] sm:$0xff]  }
  0x13   :  { %v946_v56 = vld [vmem:[%s1194_s1 + $0x120] sm:$0xff]   ;;  %v950_v60 = vld [vmem:[%s1194_s1 + $0x128] sm:$0xff]   ;;  %v952_v62 = vld [vmem:[%s1194_s1 + $0x170] sm:$0xff]  }
  0x14   :  { %813 = vmatpush3.bf16.msra.mxu0 %v910_v18  ;;  %v947_v57 = vld [vmem:[%s1194_s1 + $0x1a0] sm:$0xff]   ;;  %v951_v61 = vld [vmem:[%s1194_s1 + $0x1a8] sm:$0xff]   ;;  %v953_v63 = vld [vmem:[%s1194_s1 + $0x1f0] sm:$0xff]  }
  0x15   :  { %835 = vmatpush3.bf16.msra.mxu1 %v911_v19  ;;  %814 = vmatprep.subr.bf16.mxu0 %v912_v20  ;;  %v954_v0 = vld [vmem:[%s1194_s1 + $0x130] sm:$0xff]   ;;  %v956_v2 = vld [vmem:[%s1194_s1 + $0x178] sm:$0xff]   ;;  %v731_v14 = vld [vmem:[%s1196_s2] ss:$0 sm:$0xff] }
  0x16   :  { %836 = vmatprep.subr.bf16.mxu1 %v913_v21  ;;  %v955_v1 = vld [vmem:[%s1194_s1 + $0x1b0] sm:$0xff]   ;;  %v957_v3 = vld [vmem:[%s1194_s1 + $0x1f8] sm:$0xff]  }
  0x17   :  { %v958_v4 = vld [vmem:[%s1194_s1 + $0x138] sm:$0xff]   ;;  %v17_v6 = vld [vmem:[%s1195_s0 + $0x10] sm:$0xff] }
  0x18   :  { %815 = vmatpush3.bf16.msra.mxu0 %v914_v22  ;;  %v959_v5 = vld [vmem:[%s1194_s1 + $0x1b8] sm:$0xff]   ;;  %v736_v7 = vcombine.low %v17_v6, %v17_v6  ;;  %v737_v8 = vcombine.high %v17_v6, %v17_v6 }
  0x19   :  { %837 = vmatpush3.bf16.msra.mxu1 %v915_v23  ;;  %816 = vmatprep.subr.bf16.mxu0 %v916_v24  ;;  %v18_v9 = vld [vmem:[%s1195_s0 + $0x18] sm:$0xff] }
  0x1a   :  { %838 = vmatprep.subr.bf16.mxu1 %v917_v25  ;;  %v738_v10 = vcombine.low %v18_v9, %v18_v9  ;;  %v739_v11 = vcombine.high %v18_v9, %v18_v9 }
  0x1c   :  { %817 = vmatpush3.bf16.msra.mxu0 %v918_v26 }
  0x1d   :  { %839 = vmatpush3.bf16.msra.mxu1 %v919_v27  ;;  %818 = vmatprep.subr.bf16.mxu0 %v920_v28 }
  0x1e   :  { %840 = vmatprep.subr.bf16.mxu1 %v921_v29 }
  0x20   :  { %819 = vmatpush3.bf16.msra.mxu0 %v922_v30 }
  0x21   :  { %841 = vmatpush3.bf16.msra.mxu1 %v923_v31  ;;  %848 = vmatprep.subr.bf16.mxu0 %v928_v38 }
  0x22   :  { %870 = vmatprep.subr.bf16.mxu1 %v929_v39 }
  0x23   :  { %599 = vmatmul.mubr.bf16.vlgmr.msra.gmra.mrb[0].mxu0 %v732_v34 }
  0x24   :  { %639 = vmatmul.mubr.bf16.vlgmr.msra.gmra.mrb[0].mxu1 %v734_v36  ;;  %849 = vmatpush3.bf16.msra.mxu0 %v930_v40 }
  0x25   :  { %871 = vmatpush3.bf16.msra.mxu1 %v931_v41  ;;  %850 = vmatprep.subr.bf16.mxu0 %v932_v42 }
  0x26   :  { %872 = vmatprep.subr.bf16.mxu1 %v933_v43  ;;  %678 = vmatprep.mubr.bf16.mxu0 %v737_v8 }
  0x27   :  { %718 = vmatprep.mubr.bf16.mxu1 %v739_v11 }
  0x28   :  { %851 = vmatpush3.bf16.msra.mxu0 %v934_v44 }
  0x29   :  { %873 = vmatpush3.bf16.msra.mxu1 %v935_v45  ;;  %852 = vmatprep.subr.bf16.mxu0 %v936_v46 }
  0x2a   :  { %874 = vmatprep.subr.bf16.mxu1 %v937_v47 }
  0x2c   :  { %853 = vmatpush3.bf16.msra.mxu0 %v938_v48 }
  0x2d   :  { %875 = vmatpush3.bf16.msra.mxu1 %v939_v49  ;;  %854 = vmatprep.subr.bf16.mxu0 %v940_v50 }
  0x2e   :  { %876 = vmatprep.subr.bf16.mxu1 %v941_v51 }
  0x30   :  { %855 = vmatpush3.bf16.msra.mxu0 %v942_v52 }
  0x31   :  { %877 = vmatpush3.bf16.msra.mxu1 %v943_v53  ;;  %856 = vmatprep.subr.bf16.mxu0 %v944_v54 }
  0x32   :  { %878 = vmatprep.subr.bf16.mxu1 %v945_v55 }
  0x34   :  { %857 = vmatpush3.bf16.msra.mxu0 %v946_v56 }
  0x35   :  { %879 = vmatpush3.bf16.msra.mxu1 %v947_v57  ;;  %858 = vmatprep.subr.bf16.mxu0 %v948_v58 }
  0x36   :  { %880 = vmatprep.subr.bf16.mxu1 %v949_v59 }
  0x38   :  { %859 = vmatpush3.bf16.msra.mxu0 %v950_v60 }
  0x39   :  { %881 = vmatpush3.bf16.msra.mxu1 %v951_v61  ;;  %860 = vmatprep.subr.bf16.mxu0 %v952_v62 }
  0x3a   :  { %882 = vmatprep.subr.bf16.mxu1 %v953_v63 }
  0x3c   :  { %861 = vmatpush3.bf16.msra.mxu0 %v954_v0 }
  0x3d   :  { %883 = vmatpush3.bf16.msra.mxu1 %v955_v1  ;;  %862 = vmatprep.subr.bf16.mxu0 %v956_v2 }
  0x3e   :  { %884 = vmatprep.subr.bf16.mxu1 %v957_v3 }
  0x40   :  { %863 = vmatpush3.bf16.msra.mxu0 %v958_v4 }
  0x41   :  { %885 = vmatpush3.bf16.msra.mxu1 %v959_v5 }
  0x43   :  { %679 = vmatmul.mubr.bf16.vlgmr.msra.gmra.mrb[4].mxu0 %v736_v7 }
  0x44   :  { %719 = vmatmul.mubr.bf16.vlgmr.msra.gmra.mrb[4].mxu1 %v738_v10 }
  0xf6   :  { %v820_v12 = vpop.f32.mrb[0].mxu0 }
  0xf7   :  { %v842_v13 = vpop.f32.mrb[0].mxu1  ;;  %v821_v15 = vpop.f32.mrb[1].mxu0 }
  0xf8   :  { %v843_v16 = vpop.f32.mrb[1].mxu1  ;;  %v822_v17 = vadd.f32 %v821_v15, %v820_v12  ;;  %v823_v19 = vpop.f32.mrb[2].mxu0 }
  0xf9   :  { %v844_v18 = vadd.f32 %v843_v16, %v842_v13  ;;  %v845_v20 = vpop.f32.mrb[2].mxu1  ;;  %v824_v21 = vpop.f32.mrb[3].mxu0 }
  0xfa   :  { %v846_v22 = vpop.f32.mrb[3].mxu1  ;;  %v601_v23 = vadd.f32 %v822_v17, %v731_v14 }
  0xfc   :  { %v641_v24 = vadd.f32 %v844_v18, %v601_v23 }
 0x116   :  { %v864_v25 = vpop.f32.mrb[4].mxu0 }
 0x117   :  { %v886_v26 = vpop.f32.mrb[4].mxu1  ;;  %v865_v27 = vpop.f32.mrb[5].mxu0 }
 0x118   :  { %v887_v28 = vpop.f32.mrb[5].mxu1  ;;  %v866_v29 = vadd.f32 %v865_v27, %v864_v25  ;;  %v867_v31 = vpop.f32.mrb[6].mxu0 }
 0x119   :  { %v888_v30 = vadd.f32 %v887_v28, %v886_v26  ;;  %v889_v32 = vpop.f32.mrb[6].mxu1  ;;  %v868_v33 = vpop.f32.mrb[7].mxu0 }
 0x11a   :  { %v890_v34 = vpop.f32.mrb[7].mxu1  ;;  %v681_v35 = vadd.f32 %v866_v29, %v641_v24 }
 0x11c   :  { %v721_v36 = vadd.f32 %v888_v30, %v681_v35 }
 0x11e   :  { %726 = vst [vmem:[%s1197_s3] sm:$0xff] %v721_v36 }

</bundles_post_ra>
